<compile_context>
chip_gen: v7x
topology: tpu7x:2x2x1
jax: 0.10.0
libtpu: 0.0.40
codegen_flags: <defaults>
</compile_context>

<pallas_src>
import jax
import jax.numpy as jnp
from jax.experimental import pallas as pl
from jax.experimental.pallas import tpu as pltpu


def attention_mlp_pooling_kernel(
    hidden_ref, obs1_ref, obs_ref,
    w_sp_ref, b_sp_ref,            # spatial embedding   (2, S)  f32, (1, S)  f32  (VPU)
    w_ve_ref, b_ve_ref,            # velocity embedding  (2, V)  f32, (1, V)  f32  (VPU)
    w_hid_ref, b_hid_ref,          # hidden embedding    (H, Dh) bf16, (1, Dh) f32
    w_qkv_hid_ref,                 # fused hid -> Q|K|V  (Dh, 3D) bf16
    w_kv_sp_ref, w_kv_ve_ref,      # fused sp/vel -> K|V (S, 2D) bf16, (V, 2D) bf16
    b_q_ref, b_k_ref, b_v_ref,     # fused biases        (1, D)  f32
    w_out_ref, b_out_ref,          # fused output proj   (D, out) bf16, (1, out) f32
    out_ref,                       # (N, out) f32
):
    obs = obs_ref[...]                                   # (N, 2)
    vel = obs - obs1_ref[...]                            # (N, 2)
    N = obs.shape[0]
    D = b_q_ref.shape[-1]

    # ---- pairwise relative coords / velocities (VPU) ----------------------
    rel = obs[None, :, :] - obs[:, None, :]              # (N, N, 2)  rel[i,j] = obs[j]-obs[i]
    relv = (vel[None, :, :] - vel[:, None, :]) * 4.0     # (N, N, 2)  (torch does rel_vel*4)

    # ---- spatial / velocity embeddings as VPU FMAs (contraction dim is 2) --
    w_sp = w_sp_ref[...]
    w_ve = w_ve_ref[...]
    spatial = jnp.maximum(
        rel[:, :, 0:1] * w_sp[0:1, :][None]
        + rel[:, :, 1:2] * w_sp[1:2, :][None]
        + b_sp_ref[...][None], 0.0)                      # (N, N, S)
    directional = jnp.maximum(
        relv[:, :, 0:1] * w_ve[0:1, :][None]
        + relv[:, :, 1:2] * w_ve[1:2, :][None]
        + b_ve_ref[...][None], 0.0)                      # (N, N, V)

    # ---- hidden embedding (Linear + ReLU), bf16 MXU ------------------------
    hid_emb = jnp.maximum(
        jnp.dot(hidden_ref[...].astype(jnp.bfloat16), w_hid_ref[...],
                preferred_element_type=jnp.float32) + b_hid_ref[...], 0.0)   # (N, Dh)

    # ---- Q + hidden-block of K/V: one wide (Dh, 3D) matmul -----------------
    qkv_hid = jnp.dot(hid_emb.astype(jnp.bfloat16), w_qkv_hid_ref[...],
                      preferred_element_type=jnp.float32)                    # (N, 3D)
    q = qkv_hid[:, :D] + b_q_ref[...]                    # (N, D)  diagonal queries
    k_hid = qkv_hid[:, D:2 * D] + b_k_ref[...]           # (N, D)  key part from hid(j)
    v_hid = qkv_hid[:, 2 * D:] + b_v_ref[...]            # (N, D)

    # ---- pairwise block of K/V: wide (., 2D) matmuls; no concat, no embedded
    sp2 = spatial.reshape(N * N, spatial.shape[-1]).astype(jnp.bfloat16)
    ve2 = directional.reshape(N * N, directional.shape[-1]).astype(jnp.bfloat16)
    kv_pair = (jnp.dot(sp2, w_kv_sp_ref[...], preferred_element_type=jnp.float32)
               + jnp.dot(ve2, w_kv_ve_ref[...], preferred_element_type=jnp.float32))  # (N*N, 2D)
    k3 = kv_pair[:, :D].reshape(N, N, D) + k_hid[None, :, :]   # (N, N, D)
    v3 = kv_pair[:, D:].reshape(N, N, D) + v_hid[None, :, :]   # (N, N, D)

    # ---- single-head scaled dot-product attention, diagonal queries only ---
    s = jnp.einsum('bqd,bkd->bqk',
                   q[:, None, :].astype(jnp.bfloat16), k3.astype(jnp.bfloat16),
                   preferred_element_type=jnp.float32) * (D ** -0.5)         # (N, 1, N)
    m = jnp.max(s, axis=-1, keepdims=True)
    e = jnp.exp(s - m)
    p = e * pl.reciprocal(jnp.sum(e, axis=-1, keepdims=True), approx=True)   # softmax
    attn = jnp.einsum('bqk,bkd->bqd',
                      p.astype(jnp.bfloat16), v3.astype(jnp.bfloat16),
                      preferred_element_type=jnp.float32)[:, 0, :]           # (N, D)

    # ---- fused (MHA out_proj -> out_projection) -----------------------------
    out_ref[...] = (
        jnp.dot(attn.astype(jnp.bfloat16), w_out_ref[...],
                preferred_element_type=jnp.float32) + b_out_ref[...])


def fuse_params(params):
    """Fuse chained Linears & fold the diagonal-query constant, outside the kernel."""
    S = params["w_sp"].shape[1]
    V = params["w_ve"].shape[1]
    wq_f = params["w_q"] @ params["w_iq"]                # (D, D)
    wk_f = params["w_k"] @ params["w_ik"]
    wv_f = params["w_v"] @ params["w_iv"]
    w_out_f = params["w_ao"] @ params["w_out"]           # (D, out)
    b_out_f = params["b_ao"] @ params["w_out"] + params["b_out"]
    # diagonal query: spatial/vel inputs are zero -> relu(bias) rows, folded into bias
    b_q = (jax.nn.relu(params["b_sp"]) @ wq_f[:S]
           + jax.nn.relu(params["b_ve"]) @ wq_f[S:S + V]
           + params["b_iq"])
    bf16 = jnp.bfloat16
    return {
        "w_sp": params["w_sp"], "b_sp": params["b_sp"],
        "w_ve": params["w_ve"], "b_ve": params["b_ve"],
        "w_hid": params["w_hid"].astype(bf16), "b_hid": params["b_hid"],
        # wide-RHS packs: hid -> Q|K|V ; spatial -> K|V ; velocity -> K|V
        "w_qkv_hid": jnp.concatenate(
            [wq_f[S + V:], wk_f[S + V:], wv_f[S + V:]], axis=1).astype(bf16),
        "w_kv_sp": jnp.concatenate([wk_f[:S], wv_f[:S]], axis=1).astype(bf16),
        "w_kv_ve": jnp.concatenate([wk_f[S:S + V], wv_f[S:S + V]], axis=1).astype(bf16),
        "b_q": b_q, "b_k": params["b_ik"], "b_v": params["b_iv"],
        "w_out": w_out_f.astype(bf16), "b_out": b_out_f,
    }


def attention_mlp_pooling(hidden_states, obs1, obs, params):
    # TODO(synk): no-hidden-embedding branch (mlp_dim_spatial + mlp_dim_vel == mlp_dim)
    #             is not exercised by the default config and not implemented here.
    # TODO(synk): for large N, add a 'parallel' grid over query rows (and batch scenes
    #             over a leading grid axis) with explicit vmem_limit_bytes; at N=8 a
    #             single gridless VMEM block is launch-latency bound anyway.
    fp = fuse_params(params)
    N = obs.shape[0]
    out_dim = fp["w_out"].shape[1]
    args = (hidden_states, obs1, obs,
            fp["w_sp"], fp["b_sp"], fp["w_ve"], fp["b_ve"],
            fp["w_hid"], fp["b_hid"],
            fp["w_qkv_hid"], fp["w_kv_sp"], fp["w_kv_ve"],
            fp["b_q"], fp["b_k"], fp["b_v"],
            fp["w_out"], fp["b_out"])
    return pl.pallas_call(
        attention_mlp_pooling_kernel,
        out_shape=jax.ShapeDtypeStruct((N, out_dim), jnp.float32),
        in_specs=[pl.BlockSpec(memory_space=pltpu.MemorySpace.VMEM)] * len(args),
        out_specs=pl.BlockSpec(memory_space=pltpu.MemorySpace.VMEM),
    )(*args)


def reference(hidden_states, obs1, obs, params):
    """Pure-JAX replica of the torch forward (full attention + eye selection), f32."""
    N = obs.shape[0]
    rel = obs[None] - obs[:, None]
    spatial = jax.nn.relu(rel @ params["w_sp"] + params["b_sp"])
    vel = obs - obs1
    relvel = (vel[None] - vel[:, None]) * 4.0
    directional = jax.nn.relu(relvel @ params["w_ve"] + params["b_ve"])
    hid = jax.nn.relu(hidden_states @ params["w_hid"] + params["b_hid"])
    hid_unf = jnp.broadcast_to(hid[None], (N, N, hid.shape[-1]))
    embedded = jnp.concatenate([spatial, directional, hid_unf], axis=2)   # (i, j, D)
    emb_t = jnp.transpose(embedded, (1, 0, 2))                            # (seq, batch, D)
    q = emb_t @ params["w_q"]
    k = emb_t @ params["w_k"]
    v = emb_t @ params["w_v"]
    q = q @ params["w_iq"] + params["b_iq"]
    k = k @ params["w_ik"] + params["b_ik"]
    v = v @ params["w_iv"] + params["b_iv"]
    D = q.shape[-1]
    qb, kb, vb = (jnp.transpose(t, (1, 0, 2)) for t in (q, k, v))         # (batch, seq, D)
    scores = jnp.einsum("bqd,bkd->bqk", qb, kb) / jnp.sqrt(jnp.float32(D))
    p = jax.nn.softmax(scores, axis=-1)
    attn = jnp.einsum("bqk,bkd->bqd", p, vb)
    attn = attn @ params["w_ao"] + params["b_ao"]                         # (batch, seq, D)
    diag = attn[jnp.arange(N), jnp.arange(N)]
    return diag @ params["w_out"] + params["b_out"]


def make_params(key, hidden_dim=128, mlp_dim=128, mlp_dim_spatial=32,
                mlp_dim_vel=32, out_dim=None):
    out_dim = out_dim or hidden_dim
    d_hid = mlp_dim - mlp_dim_spatial - mlp_dim_vel
    assert d_hid > 0  # TODO(synk): no-hidden-embedding branch (S+V == mlp_dim) not exercised here
    ks = jax.random.split(key, 21)
    scale = 0.1

    def w(k, shape):
        return (scale * jax.random.normal(k, shape)).astype(jnp.float32)

    return {
        "w_sp": w(ks[0], (2, mlp_dim_spatial)),  "b_sp": w(ks[1], (1, mlp_dim_spatial)),
        "w_ve": w(ks[2], (2, mlp_dim_vel)),      "b_ve": w(ks[3], (1, mlp_dim_vel)),
        "w_hid": w(ks[4], (hidden_dim, d_hid)),  "b_hid": w(ks[5], (1, d_hid)),
        "w_q": w(ks[6], (mlp_dim, mlp_dim)),
        "w_k": w(ks[7], (mlp_dim, mlp_dim)),
        "w_v": w(ks[8], (mlp_dim, mlp_dim)),
        "w_iq": w(ks[9], (mlp_dim, mlp_dim)),    "b_iq": w(ks[10], (1, mlp_dim)),
        "w_ik": w(ks[11], (mlp_dim, mlp_dim)),   "b_ik": w(ks[12], (1, mlp_dim)),
        "w_iv": w(ks[13], (mlp_dim, mlp_dim)),   "b_iv": w(ks[14], (1, mlp_dim)),
        "w_ao": w(ks[15], (mlp_dim, mlp_dim)),   "b_ao": w(ks[16], (1, mlp_dim)),
        "w_out": w(ks[17], (mlp_dim, out_dim)),  "b_out": w(ks[18], (1, out_dim)),
    }


if __name__ == "__main__":
    N = 8            # number of pedestrians in the scene
    hidden_dim = 128
    mlp_dim = 128

    key = jax.random.PRNGKey(0)
    k_h, k_o1, k_o, k_p = jax.random.split(key, 4)
    hidden_states = jax.random.normal(k_h, (N, hidden_dim), dtype=jnp.float32)
    obs1 = jax.random.normal(k_o1, (N, 2), dtype=jnp.float32)
    obs = obs1 + 0.1 * jax.random.normal(k_o, (N, 2), dtype=jnp.float32)
    params = make_params(k_p, hidden_dim=hidden_dim, mlp_dim=mlp_dim)

    out = attention_mlp_pooling(hidden_states, obs1, obs, params)
    out = jax.block_until_ready(out)

    ref = jax.block_until_ready(reference(hidden_states, obs1, obs, params))
    assert out.shape == (N, hidden_dim)
    # bf16 MXU operands (f32 accumulation) + approx reciprocal -> ~1e-2-scale rounding
    # vs. the pure-f32 reference; tolerance widened accordingly.
    max_err = float(jnp.max(jnp.abs(out - ref)))
    assert jnp.allclose(out, ref, rtol=2e-2, atol=5e-2), max_err

    print("KERNEL_OK")
</pallas_src>

<mosaic_0001>
module attributes {stable_mosaic.version = 11 : i64} {
  func.func @attention_mlp_pooling_kernel(%arg0: memref<8x128xf32, #tpu.memory_space<vmem>>, %arg1: memref<8x2xf32, #tpu.memory_space<vmem>>, %arg2: memref<8x2xf32, #tpu.memory_space<vmem>>, %arg3: memref<2x32xf32, #tpu.memory_space<vmem>>, %arg4: memref<1x32xf32, #tpu.memory_space<vmem>>, %arg5: memref<2x32xf32, #tpu.memory_space<vmem>>, %arg6: memref<1x32xf32, #tpu.memory_space<vmem>>, %arg7: memref<128x64xbf16, #tpu.memory_space<vmem>>, %arg8: memref<1x64xf32, #tpu.memory_space<vmem>>, %arg9: memref<64x384xbf16, #tpu.memory_space<vmem>>, %arg10: memref<32x256xbf16, #tpu.memory_space<vmem>>, %arg11: memref<32x256xbf16, #tpu.memory_space<vmem>>, %arg12: memref<1x128xf32, #tpu.memory_space<vmem>>, %arg13: memref<1x128xf32, #tpu.memory_space<vmem>>, %arg14: memref<1x128xf32, #tpu.memory_space<vmem>>, %arg15: memref<128x128xbf16, #tpu.memory_space<vmem>>, %arg16: memref<1x128xf32, #tpu.memory_space<vmem>>, %arg17: memref<8x128xf32, #tpu.memory_space<vmem>>) attributes {dimension_semantics = [], scalar_prefetch = 0 : i64, scratch_operands = 0 : i64, tpu.core_type = #tpu.core_type<tc>} {
    %c0 = arith.constant 0 : index
    %c0_0 = arith.constant 0 : index
    %0 = vector.load %arg2[%c0, %c0_0] : memref<8x2xf32, #tpu.memory_space<vmem>>, vector<8x2xf32>
    %c0_1 = arith.constant 0 : index
    %c0_2 = arith.constant 0 : index
    %1 = vector.load %arg1[%c0_1, %c0_2] : memref<8x2xf32, #tpu.memory_space<vmem>>, vector<8x2xf32>
    %2 = arith.subf %0, %1 : vector<8x2xf32>
    %3 = vector.shape_cast %0 : vector<8x2xf32> to vector<1x8x2xf32>
    %4 = vector.shape_cast %0 : vector<8x2xf32> to vector<8x1x2xf32>
    %5 = vector.broadcast %3 : vector<1x8x2xf32> to vector<8x8x2xf32>
    %6 = vector.broadcast %4 : vector<8x1x2xf32> to vector<8x8x2xf32>
    %7 = arith.subf %5, %6 : vector<8x8x2xf32>
    %8 = vector.shape_cast %2 : vector<8x2xf32> to vector<1x8x2xf32>
    %9 = vector.shape_cast %2 : vector<8x2xf32> to vector<8x1x2xf32>
    %10 = vector.broadcast %8 : vector<1x8x2xf32> to vector<8x8x2xf32>
    %11 = vector.broadcast %9 : vector<8x1x2xf32> to vector<8x8x2xf32>
    %12 = arith.subf %10, %11 : vector<8x8x2xf32>
    %cst = arith.constant 4.000000e+00 : f32
    %13 = vector.broadcast %cst : f32 to vector<8x8x2xf32>
    %14 = arith.mulf %12, %13 : vector<8x8x2xf32>
    %c0_3 = arith.constant 0 : index
    %c0_4 = arith.constant 0 : index
    %15 = vector.load %arg3[%c0_3, %c0_4] : memref<2x32xf32, #tpu.memory_space<vmem>>, vector<2x32xf32>
    %c0_5 = arith.constant 0 : index
    %c0_6 = arith.constant 0 : index
    %16 = vector.load %arg5[%c0_5, %c0_6] : memref<2x32xf32, #tpu.memory_space<vmem>>, vector<2x32xf32>
    %17 = vector.extract_strided_slice %7 {offsets = [0, 0, 0], sizes = [8, 8, 1], strides = [1, 1, 1]} : vector<8x8x2xf32> to vector<8x8x1xf32>
    %18 = vector.extract_strided_slice %15 {offsets = [0, 0], sizes = [1, 32], strides = [1, 1]} : vector<2x32xf32> to vector<1x32xf32>
    %19 = vector.shape_cast %18 : vector<1x32xf32> to vector<1x1x32xf32>
    %20 = vector.broadcast %17 : vector<8x8x1xf32> to vector<8x8x32xf32>
    %21 = vector.broadcast %19 : vector<1x1x32xf32> to vector<8x8x32xf32>
    %22 = arith.mulf %20, %21 : vector<8x8x32xf32>
    %23 = vector.extract_strided_slice %7 {offsets = [0, 0, 1], sizes = [8, 8, 1], strides = [1, 1, 1]} : vector<8x8x2xf32> to vector<8x8x1xf32>
    %24 = vector.extract_strided_slice %15 {offsets = [1, 0], sizes = [1, 32], strides = [1, 1]} : vector<2x32xf32> to vector<1x32xf32>
    %25 = vector.shape_cast %24 : vector<1x32xf32> to vector<1x1x32xf32>
    %26 = vector.broadcast %23 : vector<8x8x1xf32> to vector<8x8x32xf32>
    %27 = vector.broadcast %25 : vector<1x1x32xf32> to vector<8x8x32xf32>
    %28 = arith.mulf %26, %27 : vector<8x8x32xf32>
    %29 = arith.addf %22, %28 : vector<8x8x32xf32>
    %c0_7 = arith.constant 0 : index
    %c0_8 = arith.constant 0 : index
    %30 = vector.load %arg4[%c0_7, %c0_8] : memref<1x32xf32, #tpu.memory_space<vmem>>, vector<1x32xf32>
    %31 = vector.shape_cast %30 : vector<1x32xf32> to vector<1x1x32xf32>
    %32 = vector.broadcast %31 : vector<1x1x32xf32> to vector<8x8x32xf32>
    %33 = arith.addf %29, %32 : vector<8x8x32xf32>
    %cst_9 = arith.constant 0.000000e+00 : f32
    %34 = vector.broadcast %cst_9 : f32 to vector<8x8x32xf32>
    %35 = arith.maximumf %33, %34 : vector<8x8x32xf32>
    %36 = vector.extract_strided_slice %14 {offsets = [0, 0, 0], sizes = [8, 8, 1], strides = [1, 1, 1]} : vector<8x8x2xf32> to vector<8x8x1xf32>
    %37 = vector.extract_strided_slice %16 {offsets = [0, 0], sizes = [1, 32], strides = [1, 1]} : vector<2x32xf32> to vector<1x32xf32>
    %38 = vector.shape_cast %37 : vector<1x32xf32> to vector<1x1x32xf32>
    %39 = vector.broadcast %36 : vector<8x8x1xf32> to vector<8x8x32xf32>
    %40 = vector.broadcast %38 : vector<1x1x32xf32> to vector<8x8x32xf32>
    %41 = arith.mulf %39, %40 : vector<8x8x32xf32>
    %42 = vector.extract_strided_slice %14 {offsets = [0, 0, 1], sizes = [8, 8, 1], strides = [1, 1, 1]} : vector<8x8x2xf32> to vector<8x8x1xf32>
    %43 = vector.extract_strided_slice %16 {offsets = [1, 0], sizes = [1, 32], strides = [1, 1]} : vector<2x32xf32> to vector<1x32xf32>
    %44 = vector.shape_cast %43 : vector<1x32xf32> to vector<1x1x32xf32>
    %45 = vector.broadcast %42 : vector<8x8x1xf32> to vector<8x8x32xf32>
    %46 = vector.broadcast %44 : vector<1x1x32xf32> to vector<8x8x32xf32>
    %47 = arith.mulf %45, %46 : vector<8x8x32xf32>
    %48 = arith.addf %41, %47 : vector<8x8x32xf32>
    %c0_10 = arith.constant 0 : index
    %c0_11 = arith.constant 0 : index
    %49 = vector.load %arg6[%c0_10, %c0_11] : memref<1x32xf32, #tpu.memory_space<vmem>>, vector<1x32xf32>
    %50 = vector.shape_cast %49 : vector<1x32xf32> to vector<1x1x32xf32>
    %51 = vector.broadcast %50 : vector<1x1x32xf32> to vector<8x8x32xf32>
    %52 = arith.addf %48, %51 : vector<8x8x32xf32>
    %cst_12 = arith.constant 0.000000e+00 : f32
    %53 = vector.broadcast %cst_12 : f32 to vector<8x8x32xf32>
    %54 = arith.maximumf %52, %53 : vector<8x8x32xf32>
    %c0_13 = arith.constant 0 : index
    %c0_14 = arith.constant 0 : index
    %55 = vector.load %arg0[%c0_13, %c0_14] : memref<8x128xf32, #tpu.memory_space<vmem>>, vector<8x128xf32>
    %56 = arith.truncf %55 : vector<8x128xf32> to vector<8x128xbf16>
    %c0_15 = arith.constant 0 : index
    %c0_16 = arith.constant 0 : index
    %57 = vector.load %arg7[%c0_15, %c0_16] : memref<128x64xbf16, #tpu.memory_space<vmem>>, vector<128x64xbf16>
    %cst_17 = arith.constant dense<0.000000e+00> : vector<8x64xf32>
    %58 = tpu.matmul %56, %57, %cst_17 {dimension_numbers = #tpu.dot_dimension_numbers<[1], [0], [0], [1], [0, 0, 1, 1], [], []>} : vector<8x128xbf16>, vector<128x64xbf16>, vector<8x64xf32> -> vector<8x64xf32>
    %c0_18 = arith.constant 0 : index
    %c0_19 = arith.constant 0 : index
    %59 = vector.load %arg8[%c0_18, %c0_19] : memref<1x64xf32, #tpu.memory_space<vmem>>, vector<1x64xf32>
    %60 = vector.broadcast %59 : vector<1x64xf32> to vector<8x64xf32>
    %61 = arith.addf %58, %60 : vector<8x64xf32>
    %cst_20 = arith.constant 0.000000e+00 : f32
    %62 = vector.broadcast %cst_20 : f32 to vector<8x64xf32>
    %63 = arith.maximumf %61, %62 : vector<8x64xf32>
    %64 = arith.truncf %63 : vector<8x64xf32> to vector<8x64xbf16>
    %c0_21 = arith.constant 0 : index
    %c0_22 = arith.constant 0 : index
    %65 = vector.load %arg9[%c0_21, %c0_22] : memref<64x384xbf16, #tpu.memory_space<vmem>>, vector<64x384xbf16>
    %cst_23 = arith.constant dense<0.000000e+00> : vector<8x384xf32>
    %66 = tpu.matmul %64, %65, %cst_23 {dimension_numbers = #tpu.dot_dimension_numbers<[1], [0], [0], [1], [0, 0, 1, 1], [], []>} : vector<8x64xbf16>, vector<64x384xbf16>, vector<8x384xf32> -> vector<8x384xf32>
    %67 = vector.extract_strided_slice %66 {offsets = [0, 0], sizes = [8, 128], strides = [1, 1]} : vector<8x384xf32> to vector<8x128xf32>
    %c0_24 = arith.constant 0 : index
    %c0_25 = arith.constant 0 : index
    %68 = vector.load %arg12[%c0_24, %c0_25] : memref<1x128xf32, #tpu.memory_space<vmem>>, vector<1x128xf32>
    %69 = vector.broadcast %68 : vector<1x128xf32> to vector<8x128xf32>
    %70 = arith.addf %67, %69 : vector<8x128xf32>
    %71 = vector.extract_strided_slice %66 {offsets = [0, 128], sizes = [8, 128], strides = [1, 1]} : vector<8x384xf32> to vector<8x128xf32>
    %c0_26 = arith.constant 0 : index
    %c0_27 = arith.constant 0 : index
    %72 = vector.load %arg13[%c0_26, %c0_27] : memref<1x128xf32, #tpu.memory_space<vmem>>, vector<1x128xf32>
    %73 = vector.broadcast %72 : vector<1x128xf32> to vector<8x128xf32>
    %74 = arith.addf %71, %73 : vector<8x128xf32>
    %75 = vector.extract_strided_slice %66 {offsets = [0, 256], sizes = [8, 128], strides = [1, 1]} : vector<8x384xf32> to vector<8x128xf32>
    %c0_28 = arith.constant 0 : index
    %c0_29 = arith.constant 0 : index
    %76 = vector.load %arg14[%c0_28, %c0_29] : memref<1x128xf32, #tpu.memory_space<vmem>>, vector<1x128xf32>
    %77 = vector.broadcast %76 : vector<1x128xf32> to vector<8x128xf32>
    %78 = arith.addf %75, %77 : vector<8x128xf32>
    %79 = vector.shape_cast %35 : vector<8x8x32xf32> to vector<64x32xf32>
    %80 = arith.truncf %79 : vector<64x32xf32> to vector<64x32xbf16>
    %81 = vector.shape_cast %54 : vector<8x8x32xf32> to vector<64x32xf32>
    %82 = arith.truncf %81 : vector<64x32xf32> to vector<64x32xbf16>
    %c0_30 = arith.constant 0 : index
    %c0_31 = arith.constant 0 : index
    %83 = vector.load %arg10[%c0_30, %c0_31] : memref<32x256xbf16, #tpu.memory_space<vmem>>, vector<32x256xbf16>
    %cst_32 = arith.constant dense<0.000000e+00> : vector<64x256xf32>
    %84 = tpu.matmul %80, %83, %cst_32 {dimension_numbers = #tpu.dot_dimension_numbers<[1], [0], [0], [1], [0, 0, 1, 1], [], []>} : vector<64x32xbf16>, vector<32x256xbf16>, vector<64x256xf32> -> vector<64x256xf32>
    %c0_33 = arith.constant 0 : index
    %c0_34 = arith.constant 0 : index
    %85 = vector.load %arg11[%c0_33, %c0_34] : memref<32x256xbf16, #tpu.memory_space<vmem>>, vector<32x256xbf16>
    %cst_35 = arith.constant dense<0.000000e+00> : vector<64x256xf32>
    %86 = tpu.matmul %82, %85, %cst_35 {dimension_numbers = #tpu.dot_dimension_numbers<[1], [0], [0], [1], [0, 0, 1, 1], [], []>} : vector<64x32xbf16>, vector<32x256xbf16>, vector<64x256xf32> -> vector<64x256xf32>
    %87 = arith.addf %84, %86 : vector<64x256xf32>
    %88 = vector.extract_strided_slice %87 {offsets = [0, 0], sizes = [64, 128], strides = [1, 1]} : vector<64x256xf32> to vector<64x128xf32>
    %89 = vector.shape_cast %88 : vector<64x128xf32> to vector<8x8x128xf32>
    %90 = vector.shape_cast %74 : vector<8x128xf32> to vector<1x8x128xf32>
    %91 = vector.broadcast %90 : vector<1x8x128xf32> to vector<8x8x128xf32>
    %92 = arith.addf %89, %91 : vector<8x8x128xf32>
    %93 = vector.extract_strided_slice %87 {offsets = [0, 128], sizes = [64, 128], strides = [1, 1]} : vector<64x256xf32> to vector<64x128xf32>
    %94 = vector.shape_cast %93 : vector<64x128xf32> to vector<8x8x128xf32>
    %95 = vector.shape_cast %78 : vector<8x128xf32> to vector<1x8x128xf32>
    %96 = vector.broadcast %95 : vector<1x8x128xf32> to vector<8x8x128xf32>
    %97 = arith.addf %94, %96 : vector<8x8x128xf32>
    %98 = vector.shape_cast %70 : vector<8x128xf32> to vector<8x1x128xf32>
    %99 = arith.truncf %98 : vector<8x1x128xf32> to vector<8x1x128xbf16>
    %100 = arith.truncf %92 : vector<8x8x128xf32> to vector<8x8x128xbf16>
    "tpu.trace_start"() <{level = 10 : i32, message = "bqd,bkd->bqk"}> : () -> ()
    %cst_36 = arith.constant dense<0.000000e+00> : vector<8x1x8xf32>
    %101 = tpu.matmul %99, %100, %cst_36 {dimension_numbers = #tpu.dot_dimension_numbers<[2], [2], [1], [1], [0, 0, 0, 1, 1, 1], [0], [0]>} : vector<8x1x128xbf16>, vector<8x8x128xbf16>, vector<8x1x8xf32> -> vector<8x1x8xf32>
    "tpu.trace_stop"() : () -> ()
    %cst_37 = arith.constant 0.0883883461 : f32
    %102 = vector.broadcast %cst_37 : f32 to vector<8x1x8xf32>
    %103 = arith.mulf %101, %102 : vector<8x1x8xf32>
    %cst_38 = arith.constant dense<0xFF800000> : vector<8x1xf32>
    %104 = vector.multi_reduction <maximumf>, %103, %cst_38 [2] : vector<8x1x8xf32> to vector<8x1xf32>
    %105 = vector.shape_cast %104 : vector<8x1xf32> to vector<8x1x1xf32>
    %106 = vector.broadcast %105 : vector<8x1x1xf32> to vector<8x1x8xf32>
    %107 = arith.subf %103, %106 : vector<8x1x8xf32>
    %108 = math.exp %107 : vector<8x1x8xf32>
    %cst_39 = arith.constant dense<0.000000e+00> : vector<8x1xf32>
    %109 = vector.multi_reduction <add>, %108, %cst_39 [2] : vector<8x1x8xf32> to vector<8x1xf32>
    %110 = vector.shape_cast %109 : vector<8x1xf32> to vector<8x1x1xf32>
    %111 = tpu.reciprocal %110 {approx = true} : vector<8x1x1xf32> -> vector<8x1x1xf32>
    %112 = vector.broadcast %111 : vector<8x1x1xf32> to vector<8x1x8xf32>
    %113 = arith.mulf %108, %112 : vector<8x1x8xf32>
    %114 = arith.truncf %113 : vector<8x1x8xf32> to vector<8x1x8xbf16>
    %115 = arith.truncf %97 : vector<8x8x128xf32> to vector<8x8x128xbf16>
    "tpu.trace_start"() <{level = 10 : i32, message = "bqk,bkd->bqd"}> : () -> ()
    %cst_40 = arith.constant dense<0.000000e+00> : vector<8x1x128xf32>
    %116 = tpu.matmul %114, %115, %cst_40 {dimension_numbers = #tpu.dot_dimension_numbers<[2], [1], [1], [2], [0, 0, 0, 1, 1, 2], [0], [0]>} : vector<8x1x8xbf16>, vector<8x8x128xbf16>, vector<8x1x128xf32> -> vector<8x1x128xf32>
    "tpu.trace_stop"() : () -> ()
    %117 = vector.shape_cast %116 : vector<8x1x128xf32> to vector<8x128xf32>
    %118 = arith.truncf %117 : vector<8x128xf32> to vector<8x128xbf16>
    %c0_41 = arith.constant 0 : index
    %c0_42 = arith.constant 0 : index
    %119 = vector.load %arg15[%c0_41, %c0_42] : memref<128x128xbf16, #tpu.memory_space<vmem>>, vector<128x128xbf16>
    %cst_43 = arith.constant dense<0.000000e+00> : vector<8x128xf32>
    %120 = tpu.matmul %118, %119, %cst_43 {dimension_numbers = #tpu.dot_dimension_numbers<[1], [0], [0], [1], [0, 0, 1, 1], [], []>} : vector<8x128xbf16>, vector<128x128xbf16>, vector<8x128xf32> -> vector<8x128xf32>
    %c0_44 = arith.constant 0 : index
    %c0_45 = arith.constant 0 : index
    %121 = vector.load %arg16[%c0_44, %c0_45] : memref<1x128xf32, #tpu.memory_space<vmem>>, vector<1x128xf32>
    %122 = vector.broadcast %121 : vector<1x128xf32> to vector<8x128xf32>
    %123 = arith.addf %120, %122 : vector<8x128xf32>
    %c0_46 = arith.constant 0 : index
    %c0_47 = arith.constant 0 : index
    %124 = vector.load %arg17[%c0_46, %c0_47] : memref<8x128xf32, #tpu.memory_space<vmem>>, vector<8x128xf32>
    tpu.vector_store %arg17[%c0_46, %c0_47], %123 {strides = array<i32>} : memref<8x128xf32, #tpu.memory_space<vmem>>, vector<8x128xf32>,
    return
  }
}

</mosaic_0001>

<bundles_post_ra>
// kernel: tpu_custom_call.1
= control target key start
LH: loop header
LB: loop body
LE: loop exit
PB: predicated region body
PF: predicated region fallthrough
CT: control target
= control target key end

     0   :  { %s3553_s0 = inlined_call_operand.hbm [shape: f32[8,128], index: 0, kind: input, shape index: {}]   ;;  %s3554_s1 = inlined_call_operand.vmem [shape: f32[8,2], index: 1, kind: input, shape index: {}]   ;;  %s3555_s2 = inlined_call_operand.vmem [shape: f32[8,2], index: 2, kind: input, shape index: {}]   ;;  %s3556_s3 = inlined_call_operand.hbm [shape: f32[2,32], index: 3, kind: input, shape index: {}]   ;;  %s3557_s4 = inlined_call_operand.vmem [shape: f32[1,32], index: 4, kind: input, shape index: {}]   ;;  %s3558_s5 = inlined_call_operand.hbm [shape: f32[2,32], index: 5, kind: input, shape index: {}]   ;;  %s3559_s6 = inlined_call_operand.hbm [shape: f32[1,32], index: 6, kind: input, shape index: {}]   ;;  %s3560_s7 = inlined_call_operand.vmem [shape: bf16[128,64], index: 7, kind: input, shape index: {}]   ;;  %s3561_s8 = inlined_call_operand.hbm [shape: f32[1,64], index: 8, kind: input, shape index: {}]   ;;  %s3562_s9 = inlined_call_operand.vmem [shape: bf16[64,384], index: 9, kind: input, shape index: {}]   ;;  %s3563_s10 = inlined_call_operand.hbm [shape: bf16[32,256], index: 10, kind: input, shape index: {}]   ;;  %s3564_s11 = inlined_call_operand.hbm [shape: bf16[32,256], index: 11, kind: input, shape index: {}]   ;;  %s3565_s12 = inlined_call_operand.hbm [shape: f32[1,128], index: 12, kind: input, shape index: {}]   ;;  %s3566_s13 = inlined_call_operand.vmem [shape: f32[1,128], index: 13, kind: input, shape index: {}]   ;;  %s3567_s14 = inlined_call_operand.vmem [shape: f32[1,128], index: 14, kind: input, shape index: {}]   ;;  %s3568_s15 = inlined_call_operand.vmem [shape: bf16[128,128], index: 15, kind: input, shape index: {}]   ;;  %s3569_s16 = inlined_call_operand.vmem [shape: f32[1,128], index: 16, kind: input, shape index: {}]   ;;  %s3570_s17 = inlined_call_operand.hbm [shape: f32[8,128], index: 17, kind: output, shape index: {}]  }
   0x1   :  { %3572 = sst [smem:[#allocation23_spill]] %s3553_s0 }
   0x2   :  { %3573 = sst [smem:[#allocation24_spill]] %s3554_s1 }
   0x3   :  { %22 = vsyncpa [#allocation3], 0 }
   0x4   :  { %23 = vsyncpa [#allocation6], 0 }
   0x5   :  { %24 = vsyncpa [#allocation9], 0 }
   0x6   :  { %25 = vsyncpa [#allocation12], 0 }
   0x7   :  { %26 = vsyncpa [#allocation15], 0 }
   0x8   :  { %27 = vsyncpa [#allocation4], 0  ;;  %s2827_s24 = smov [#allocation5]   ;;  %s2828_s26 = smov [#allocation8]  }
   0x9   :  { %s48_s25 = sshll.u32 %s2827_s24, 4  ;;  %s70_s27 = sshll.u32 %s2828_s26, 4  ;;  %s49_s25 = int_to_ptr.vmem [resolvable:$true] %s48_s25  ;;  %s71_s27 = int_to_ptr.vmem [resolvable:$true] %s70_s27 }
   0xa   :  { %s2617_s0 = scalar_lea.hbm %s3556_s3, 32 }
   0xb   :  { %p2618_p0 = scmp.ne.s32.totalorder %s3556_s3, %s2617_s0  ;;  %p2621_p1 = scmp.lt.u32.totalorder %s2617_s0, %s3556_s3 }
   0xd   :  { %p2623_p2 = pnand %p2621_p1, %p2618_p0 }
   0xf   :  { %2626 = shalt.err (!%p2623_p2)
}
  0x10   :  { %s2627_s20 = scalar_lea.vmem %s49_s25, 32  ;;  %p2632_p4 = scmp.lt.s32.totalorder %s49_s25, %s49_s25 }
  0x11   :  { %p2628_p3 = scmp.ne.s32.totalorder %s49_s25, %s2627_s20  ;;  %p2633_p5 = scmp.lt.s32.totalorder %s2627_s20, %s2627_s20 }
  0x13   :  { %p2634_p6 = por %p2633_p5, %p2632_p4 }
  0x15   :  { %p2635_p7 = pnand %p2634_p6, %p2628_p3 }
  0x17   :  { %2638 = shalt.err (!%p2635_p7)
}
  0x18   :  { %51 = dma.hbm_to_vmem [thread:$0]  %s3556_s3, 32, %s49_s25, [#allocation6]  }
  0x19   :  { %s2639_s26 = scalar_lea.hbm %s3559_s6, 16 }
  0x1a   :  { %p2640_p8 = scmp.ne.s32.totalorder %s3559_s6, %s2639_s26  ;;  %p2643_p9 = scmp.lt.u32.totalorder %s2639_s26, %s3559_s6 }
  0x1c   :  { %p2645_p10 = pnand %p2643_p9, %p2640_p8 }
  0x1e   :  { %2648 = shalt.err (!%p2645_p10)
}
  0x1f   :  { %s2649_s18 = scalar_lea.vmem %s71_s27, 16  ;;  %s2653_s19 = scalar_lea.vmem %s71_s27, 32 }
  0x20   :  { %p2650_p11 = scmp.ne.s32.totalorder %s71_s27, %s2649_s18  ;;  %p2654_p12 = scmp.lt.s32.totalorder %s71_s27, %s71_s27 }
  0x21   :  { %p2655_p13 = scmp.lt.s32.totalorder %s2653_s19, %s2649_s18 }
  0x23   :  { %p2656_p0 = por %p2655_p13, %p2654_p12 }
  0x25   :  { %p2657_p1 = pnand %p2656_p0, %p2650_p11 }
  0x27   :  { %2660 = shalt.err (!%p2657_p1)
}
  0x28   :  { %73 = dma.hbm_to_vmem [thread:$0]  %s3559_s6, 16, %s71_s27, [#allocation9]  }
  0x29   :  { %s2829_s1 = smov [#allocation11]   ;;  %s2661_s23 = scalar_lea.hbm %s3563_s10, 512 }
  0x2a   :  { %s93_s20 = sshll.u32 %s2829_s1, 4  ;;  %p2662_p2 = scmp.ne.s32.totalorder %s3563_s10, %s2661_s23  ;;  %s94_s20 = int_to_ptr.vmem [resolvable:$true] %s93_s20 }
  0x2b   :  { %p2665_p3 = scmp.lt.u32.totalorder %s2661_s23, %s3563_s10 }
  0x2d   :  { %p2667_p4 = pnand %p2665_p3, %p2662_p2 }
  0x2f   :  { %2670 = shalt.err (!%p2667_p4)
}
  0x30   :  { %s2671_s0 = scalar_lea.vmem %s94_s20, 512  ;;  %p2676_p6 = scmp.lt.s32.totalorder %s94_s20, %s94_s20 }
  0x31   :  { %p2672_p5 = scmp.ne.s32.totalorder %s94_s20, %s2671_s0  ;;  %p2677_p7 = scmp.lt.s32.totalorder %s2671_s0, %s2671_s0 }
  0x33   :  { %p2678_p8 = por %p2677_p7, %p2676_p6 }
  0x35   :  { %p2679_p9 = pnand %p2678_p8, %p2672_p5 }
  0x37   :  { %2682 = shalt.err (!%p2679_p9)
}
  0x38   :  { %s2830_s6 = smov 128   ;;  %s2831_s27 = smov 8  }
  0x39   :  { %99 = dma.hbm_to_vmem [thread:$0]  %s3563_s10, 512, %s94_s20, [#allocation12], %s2830_s6, %s2830_s6, %s2831_s27  }
  0x3a   :  { %s2832_s19 = smov [#allocation2]   ;;  %s2833_s25 = smov [#allocation7]  }
  0x3b   :  { %s34_s3 = sshll.u32 %s2832_s19, 4  ;;  %s60_s1 = sshll.u32 %s2833_s25, 4  ;;  %s35_s3 = int_to_ptr.vmem [resolvable:$true] %s34_s3  ;;  %s61_s1 = int_to_ptr.vmem [resolvable:$true] %s60_s1 }
  0x3c   :  { %s3574_s23 = sld [smem:[#allocation23_spill]] }
  0x42   :  { %s2683_s24 = scalar_lea.hbm %s3574_s23, 128 }
  0x43   :  { %p2684_p10 = scmp.ne.s32.totalorder %s3574_s23, %s2683_s24  ;;  %p2687_p11 = scmp.lt.u32.totalorder %s2683_s24, %s3574_s23 }
  0x45   :  { %p2689_p12 = pnand %p2687_p11, %p2684_p10 }
  0x47   :  { %2692 = shalt.err (!%p2689_p12)
}
  0x48   :  { %s2693_s10 = scalar_lea.vmem %s35_s3, 128  ;;  %p2698_p0 = scmp.lt.s32.totalorder %s35_s3, %s35_s3 }
  0x49   :  { %p2694_p13 = scmp.ne.s32.totalorder %s35_s3, %s2693_s10  ;;  %p2699_p1 = scmp.lt.s32.totalorder %s2693_s10, %s2693_s10 }
  0x4b   :  { %p2700_p2 = por %p2699_p1, %p2698_p0 }
  0x4d   :  { %p2701_p3 = pnand %p2700_p2, %p2694_p13 }
  0x4f   :  { %2704 = shalt.err (!%p2701_p3)
}
  0x50   :  { %37 = dma.hbm_to_vmem [thread:$0]  %s3574_s23, 128, %s35_s3, [#allocation3]  }
  0x51   :  { %s2705_s25 = scalar_lea.hbm %s3558_s5, 32 }
  0x52   :  { %p2706_p4 = scmp.ne.s32.totalorder %s3558_s5, %s2705_s25  ;;  %p2709_p5 = scmp.lt.u32.totalorder %s2705_s25, %s3558_s5 }
  0x54   :  { %p2711_p6 = pnand %p2709_p5, %p2706_p4 }
  0x56   :  { %2714 = shalt.err (!%p2711_p6)
}
  0x57   :  { %s2715_s28 = scalar_lea.vmem %s61_s1, 32  ;;  %p2720_p8 = scmp.lt.s32.totalorder %s61_s1, %s61_s1 }
  0x58   :  { %p2716_p7 = scmp.ne.s32.totalorder %s61_s1, %s2715_s28  ;;  %p2721_p9 = scmp.lt.s32.totalorder %s2715_s28, %s2715_s28 }
  0x5a   :  { %p2722_p10 = por %p2721_p9, %p2720_p8 }
  0x5c   :  { %p2723_p11 = pnand %p2722_p10, %p2716_p7 }
  0x5e   :  { %2726 = shalt.err (!%p2723_p11)
}
  0x5f   :  { %63 = dma.hbm_to_vmem [thread:$0]  %s3558_s5, 32, %s61_s1, [#allocation6]  }
  0x60   :  { %s2834_s29 = smov [#allocation10]   ;;  %s2835_s10 = smov [#allocation13]  }
  0x61   :  { %s82_s0 = sshll.u32 %s2834_s29, 4  ;;  %s105_s20 = sshll.u32 %s2835_s10, 4  ;;  %s83_s0 = int_to_ptr.vmem [resolvable:$true] %s82_s0  ;;  %s106_s20 = int_to_ptr.vmem [resolvable:$true] %s105_s20 }
  0x62   :  { %s2727_s19 = scalar_lea.hbm %s3561_s8, 16 }
  0x63   :  { %p2728_p12 = scmp.ne.s32.totalorder %s3561_s8, %s2727_s19  ;;  %p2731_p13 = scmp.lt.u32.totalorder %s2727_s19, %s3561_s8 }
  0x65   :  { %p2733_p0 = pnand %p2731_p13, %p2728_p12 }
  0x67   :  { %2736 = shalt.err (!%p2733_p0)
}
  0x68   :  { %s2737_s5 = scalar_lea.vmem %s83_s0, 16  ;;  %s2741_s1 = scalar_lea.vmem %s83_s0, 32 }
  0x69   :  { %p2738_p1 = scmp.ne.s32.totalorder %s83_s0, %s2737_s5  ;;  %p2742_p2 = scmp.lt.s32.totalorder %s83_s0, %s83_s0 }
  0x6a   :  { %p2743_p3 = scmp.lt.s32.totalorder %s2741_s1, %s2737_s5 }
  0x6c   :  { %p2744_p4 = por %p2743_p3, %p2742_p2 }
  0x6e   :  { %p2745_p5 = pnand %p2744_p4, %p2738_p1 }
  0x70   :  { %2748 = shalt.err (!%p2745_p5)
}
  0x71   :  { %85 = dma.hbm_to_vmem [thread:$0]  %s3561_s8, 16, %s83_s0, [#allocation9]  }
  0x72   :  { %s2749_s29 = scalar_lea.hbm %s3564_s11, 512 }
  0x73   :  { %p2750_p6 = scmp.ne.s32.totalorder %s3564_s11, %s2749_s29  ;;  %p2753_p7 = scmp.lt.u32.totalorder %s2749_s29, %s3564_s11 }
  0x75   :  { %p2755_p8 = pnand %p2753_p7, %p2750_p6 }
  0x77   :  { %2758 = shalt.err (!%p2755_p8)
}
  0x78   :  { %s2759_s25 = scalar_lea.vmem %s106_s20, 512  ;;  %p2764_p10 = scmp.lt.s32.totalorder %s106_s20, %s106_s20 }
  0x79   :  { %p2760_p9 = scmp.ne.s32.totalorder %s106_s20, %s2759_s25  ;;  %p2765_p11 = scmp.lt.s32.totalorder %s2759_s25, %s2759_s25 }
  0x7b   :  { %p2766_p12 = por %p2765_p11, %p2764_p10 }
  0x7d   :  { %p2767_p13 = pnand %p2766_p12, %p2760_p9 }
  0x7f   :  { %2770 = shalt.err (!%p2767_p13)
}
  0x80   :  { %111 = dma.hbm_to_vmem [thread:$0]  %s3564_s11, 512, %s106_s20, [#allocation12], %s2830_s6, %s2830_s6, %s2831_s27  }
  0x81   :  { %s2836_s21 = smov [#allocation14]   ;;  %s2771_s1 = scalar_lea.hbm %s3565_s12, 16 }
  0x82   :  { %s118_s22 = sshll.u32 %s2836_s21, 4  ;;  %p2772_p0 = scmp.ne.s32.totalorder %s3565_s12, %s2771_s1  ;;  %s119_s22 = int_to_ptr.vmem [resolvable:$true] %s118_s22 }
  0x83   :  { %p2775_p1 = scmp.lt.u32.totalorder %s2771_s1, %s3565_s12 }
  0x85   :  { %p2777_p2 = pnand %p2775_p1, %p2772_p0 }
  0x87   :  { %2780 = shalt.err (!%p2777_p2)
}
  0x88   :  { %s2781_s29 = scalar_lea.vmem %s119_s22, 16  ;;  %s2785_s11 = scalar_lea.vmem %s119_s22, 32 }
  0x89   :  { %p2782_p3 = scmp.ne.s32.totalorder %s119_s22, %s2781_s29  ;;  %p2786_p4 = scmp.lt.s32.totalorder %s119_s22, %s119_s22 }
  0x8a   :  { %p2787_p5 = scmp.lt.s32.totalorder %s2785_s11, %s2781_s29 }
  0x8c   :  { %p2788_p6 = por %p2787_p5, %p2786_p4 }
  0x8e   :  { %p2789_p7 = pnand %p2788_p6, %p2782_p3 }
  0x90   :  { %2792 = shalt.err (!%p2789_p7)
}
  0x91   :  { %121 = dma.hbm_to_vmem [thread:$0]  %s3565_s12, 16, %s119_s22, [#allocation15]  }
  0x92   :  { %2815 = dma.done.wait [#allocation3], 128  }
  0x93   :  { %2816 = vsyncadd [#allocation3], 4294967168 }
  0x94   :  { %2817 = dma.done.wait [#allocation6], 64  }
  0x95   :  { %2818 = vsyncadd [#allocation6], 4294967232 }
  0x96   :  { %2819 = dma.done.wait [#allocation9], 32  }
  0x97   :  { %2820 = vsyncadd [#allocation9], 4294967264 }
  0x98   :  { %2821 = dma.done.wait [#allocation12], 1024  }
  0x99   :  { %2822 = vsyncadd [#allocation12], 4294966272 }
  0x9a   :  { %2823 = dma.done.wait [#allocation15], 16  }
  0x9b   :  { %2824 = vsyncadd [#allocation15], 4294967280  ;;  %v2837_v0 = vmov 0.0   ;;  %vm2838_vm0 = vmmov 0   ;;  %v2839_v1 = vmov 0   ;;  %v163_v4 = vlaneseq  ;;  %v2540_v5 = vld [vmem:[%s3560_s7] sm:$0xff]  }
  0x9c   :  { %2336 = vmatprep.subr.bf16.mxu0 %v2837_v0  ;;  %2352 = vmatprep.mubr.msk.bf16.mxu0 %vm2838_vm0, %v2837_v0  ;;  %v2840_v2 = vmov 1966171168   ;;  %v2541_v8 = vld [vmem:[%s3560_s7 + $0x8] sm:$0xff]   ;;  %v2542_v10 = vld [vmem:[%s3560_s7 + $0x10] sm:$0xff]   ;;  %v3060_v11 = vld [vmem:[%s3555_s2] sm:$0xff]  ;;  %s3575_s22 = sld [smem:[#allocation24_spill]] }
  0x9d   :  { %2520 = vset.pattern.permute.xlu1 %v2839_v1  ;;  %2521 = vset.pattern.permute.xlu0 %v2839_v1  ;;  %v161_v3 = vunpack.c.l.s4 %v2840_v2  ;;  %v3044_v7 = vshrl.u32 %v163_v4, 7  ;;  %v2543_v13 = vld [vmem:[%s3560_s7 + $0x18] sm:$0xff]   ;;  %v159_v17 = vcombine.high %v3060_v11, %v3060_v11  ;;  %v2544_v20 = vld [vmem:[%s3560_s7 + $0x20] sm:$0xff]   ;;  %v2545_v31 = vld [vmem:[%s3560_s7 + $0x28] sm:$0xff]   ;;  %v2841_v41 = vmov 1   ;;  %s2842_s26 = smov [#allocation16]  }
  0x9e   :  { %849 = vmatprep.mubr.bf16.mxu1 %v2839_v1  ;;  %2337 = vmatpush3.bf16.msra.mxu0 %v2540_v5  ;;  %v2546_v45 = vld [vmem:[%s3560_s7 + $0x30] sm:$0xff]   ;;  %v2547_v53 = vld [vmem:[%s3560_s7 + $0x38] sm:$0xff]   ;;  %v618_v54 = vld [vmem:[#allocation2] sm:$0xff]  ;;  %vm958_vm1 = vcmask 261120   ;;  %vm813_vm2 = vcmask 523264   ;;  %vm1676_vm3 = vcmask 1043456  }
  0x9f   :  { %v162_v6 = vunpack.c.0.s8 %v161_v3  ;;  %2338 = vmatprep.subr.bf16.mxu0 %v2837_v0  ;;  %v3071_v15 = vsub.s32 0, %v3044_v7  ;;  %v619_v59 = vpack.c.bf16 %v618_v54, %v618_v54  ;;  %v3149_v62 = vld [vmem:[#allocation13] ss:$8 sps:$4 sm:$0xff]   ;;  %v3151_v63 = vld [vmem:[#allocation13 + $0x4] ss:$8 sps:$4 sm:$0xff]   ;;  %vm1567_vm4 = vcmask 57344  }
  0xa0   :  { %v3157_v4 = vld [vmem:[#allocation13 + $0x14] ss:$8 sps:$4 sm:$0xff]   ;;  %vm1672_vm5 = vcmask 64512   ;;  %vm2090_vm6 = vcmask 1041409   ;;  %vm2093_vm7 = vcmask 1042434   ;;  %vm2096_vm8 = vcmask 1043459  }
  0xa1   :  { %v3051_v9 = vsub.s32 %v162_v6, %v3044_v7  ;;  %vm2099_vm9 = vcmask 1044484   ;;  %vm2102_vm10 = vcmask 1045509   ;;  %vm2105_vm11 = vcmask 1046534   ;;  %s2207_s28 = sshll.u32 %s2842_s26, 4  ;;  %s2208_s28 = int_to_ptr.vmem [resolvable:$true] %s2207_s28 }
  0xa2   :  { %2339 = vmatpush3.bf16.msra.mxu0 %v2541_v8  ;;  %v156_v12 = vld [vmem:[%s3575_s22] sm:$0xff]  ;;  %vm2108_vm12 = vcmask 1047559   ;;  %s2793_s3 = scalar_lea.vmem %s2208_s28, 128  ;;  %p2798_p9 = scmp.lt.s32.totalorder %s2208_s28, %s2208_s28 }
  0xa3   :  { %2340 = vmatprep.subr.bf16.mxu0 %v2837_v0  ;;  %v166_v14 = vrot.slane %v3060_v11, %v3051_v9  ;;  %v3074_v16 = vsub.f32 %v3060_v11, %v156_v12  ;;  %v3093_v25 = vrot.slane %v159_v17, %v3051_v9  ;;  %v3162_v8 = vld [vmem:[#allocation13 + $0x10] ss:$8 sps:$4 sm:$0xff]   ;;  %p2794_p8 = scmp.ne.s32.totalorder %s2208_s28, %s2793_s3  ;;  %p2799_p10 = scmp.lt.s32.totalorder %s2793_s3, %s2793_s3 }
  0xa5   :  { %v3080_v18 = vrot.slane %v166_v14, %v3051_v9  ;;  %v264_v19 = vrot.slane %v3074_v16, %v3051_v9  ;;  %v257_v21 = vcombine.high %v3074_v16, %v3074_v16  ;;  %v3114_v39 = vrot.slane %v3093_v25, %v3051_v9  ;;  %p2800_p11 = por %p2799_p10, %p2798_p9 }
  0xa6   :  { %2341 = vmatpush3.bf16.msra.mxu0 %v2542_v10  ;;  %v174_v47 = vcombine.high %v166_v14, %v166_v14  ;;  %v175_v14 = vcombine.high %v3093_v25, %v3093_v25 }
  0xa7   :  { %2342 = vmatprep.subr.bf16.mxu0 %v2837_v0  ;;  %v211_v22 = vrot.slane %v3080_v18, %v3071_v15  ;;  %v280_v23 = vrot.slane %v264_v19, %v3051_v9  ;;  %v272_v24 = vcombine.high %v264_v19, %v264_v19  ;;  %v271_v30 = vrot.slane %v257_v21, %v3051_v9  ;;  %p2801_p12 = pnand %p2800_p11, %p2794_p8 }
  0xa8   :  { %v205_v44 = vcombine.high %v3114_v39, %v3114_v39  ;;  %v196_v57 = vrot.slane %v174_v47, %v3051_v9  ;;  %v204_v60 = vcombine.high %v3080_v18, %v3080_v18  ;;  %v203_v19 = vrot.slane %v175_v14, %v3051_v9 }
  0xa9   :  { %v3097_v26 = vsub.f32 %v3060_v11, %v211_v22  ;;  %v309_v27 = vrot.slane %v280_v23, %v3071_v15  ;;  %v294_v28 = vrot.slane %v272_v24, %v3051_v9  ;;  %v302_v29 = vcombine.high %v280_v23, %v280_v23  ;;  %v2557_v23 = vld [vmem:[#allocation11 + $0x4] ss:$8 sps:$4 sm:$0xff]  }
  0xaa   :  { %2343 = vmatpush3.bf16.msra.mxu0 %v2543_v13  ;;  %v273_v40 = vcombine.high %v271_v30, %v271_v30  ;;  %v235_v49 = vrot.slane %v205_v44, %v3071_v15  ;;  %v215_v61 = vrot.slane %v196_v57, %v3071_v15  ;;  %v219_v3 = vrot.slane %v204_v60, %v3071_v15  ;;  %v2572_v44 = vld [vmem:[%s3562_s9 + $0x48] ss:$12 sps:$4 sm:$0xff]  }
  0xab   :  { %2344 = vmatprep.subr.bf16.mxu0 %v2837_v0  ;;  %366 = vperm.xlu1 %2520, %v3097_v26   ;;  %v346_v32 = vsub.f32 %v3074_v16, %v309_v27  ;;  %v313_v33 = vrot.slane %v294_v28, %v3071_v15  ;;  %v317_v34 = vrot.slane %v302_v29, %v3071_v15 }
  0xac   :  { %v304_v35 = vcombine.high %v294_v28, %v294_v28  ;;  %v3124_v46 = vrot.slane %v273_v40, %v3051_v9  ;;  %v3132_v52 = vsub.f32 %v3060_v11, %v235_v49  ;;  %v249_v2 = vsub.f32 %v3060_v11, %v215_v61  ;;  %v2569_v40 = vld [vmem:[%s3562_s9 + $0x30] ss:$12 sps:$4 sm:$0xff]  }
  0xad   :  { %v354_v36 = vmul.f32 4.0, %v346_v32  ;;  %v347_v37 = vsub.f32 %v3074_v16, %v313_v33  ;;  %v348_v43 = vsub.f32 %v3074_v16, %v317_v34  ;;  %v287_v5 = vrot.slane %v271_v30, %v3051_v9  ;;  %v2561_v33 = vld [vmem:[%s3562_s9 + $0x4] ss:$12 sps:$4 sm:$0xff]   ;;  %v2563_v34 = vld [vmem:[%s3562_s9] ss:$12 sps:$4 sm:$0xff]  }
  0xae   :  { %2345 = vmatpush3.bf16.msra.mxu0 %v2544_v20  ;;  %v321_v38 = vrot.slane %v304_v35, %v3071_v15  ;;  %v305_v50 = vcombine.high %v3124_v46, %v3124_v46  ;;  %v206_v6 = vcombine.high %v196_v57, %v196_v57  ;;  %v250_v10 = vsub.f32 %v3060_v11, %v219_v3  ;;  %v2564_v35 = vld [vmem:[%s3562_s9 + $0x1c] ss:$12 sps:$4 sm:$0xff]  }
  0xaf   :  { %2346 = vmatprep.subr.bf16.mxu0 %v2837_v0  ;;  %2522 = vset.pattern.permute.xlu1 %v2841_v41  ;;  %v355_v42 = vmul.f32 4.0, %v347_v37  ;;  %v356_v51 = vmul.f32 4.0, %v348_v43  ;;  %v325_v12 = vrot.slane %v287_v5, %v3071_v15  ;;  %v227_v21 = vrot.slane %v3114_v39, %v3071_v15  ;;  %v2566_v37 = vld [vmem:[%s3562_s9 + $0x18] ss:$12 sps:$4 sm:$0xff]   ;;  %v2567_v39 = vld [vmem:[%s3562_s9 + $0x34] ss:$12 sps:$4 sm:$0xff]  }
  0xb0   :  { %493 = vperm.xlu0 %2521, %v354_v36   ;;  %544 = vperm.xlu1 %2522, %v354_v36   ;;  %v349_v48 = vsub.f32 %v3074_v16, %v321_v38  ;;  %v3138_v55 = vrot.slane %v305_v50, %v3071_v15  ;;  %v223_v13 = vrot.slane %v206_v6, %v3071_v15  ;;  %v2570_v43 = vld [vmem:[%s3562_s9 + $0x4c] ss:$12 sps:$4 sm:$0xff]   ;;  %v362_v3 = vld [vmem:[#allocation5] sm:$0x3] }
  0xb1   :  { %v350_v17 = vsub.f32 %v3074_v16, %v325_v12  ;;  %v231_v22 = vrot.slane %v203_v19, %v3071_v15  ;;  %v207_v24 = vcombine.high %v203_v19, %v203_v19  ;;  %v303_v25 = vcombine.high %v287_v5, %v287_v5  ;;  %817 = vmatprep.subr.bf16.mxu1 %v2561_v33  ;;  %v2555_v12 = vld [vmem:[#allocation11] ss:$8 sps:$4 sm:$0xff]   ;;  %v2560_v19 = vld [vmem:[#allocation11 + $0x14] ss:$8 sps:$4 sm:$0xff]  }
  0xb2   :  { %2347 = vmatpush3.bf16.msra.mxu0 %v2545_v31  ;;  %v357_v56 = vmul.f32 4.0, %v349_v48  ;;  %v353_v58 = vsub.f32 %v3074_v16, %v3138_v55  ;;  %v251_v18 = vsub.f32 %v3060_v11, %v223_v13  ;;  %v329_v30 = vrot.slane %v3124_v46, %v3071_v15  ;;  %818 = vmatpush1.bf16.msra.mxu1 %v2563_v34 }
  0xb3   :  { %2348 = vmatprep.subr.bf16.mxu0 %v2837_v0  ;;  %v358_v20 = vmul.f32 4.0, %v350_v17  ;;  %v253_v27 = vsub.f32 %v3060_v11, %v231_v22  ;;  %v239_v28 = vrot.slane %v207_v24, %v3071_v15  ;;  %v333_v29 = vrot.slane %v303_v25, %v3071_v15  ;;  %819 = vmatprep.subr.bf16.mxu1 %v2564_v35  ;;  %v2558_v24 = vld [vmem:[#allocation11 + $0x10] ss:$8 sps:$4 sm:$0xff]  }
  0xb4   :  { %498 = vperm.xlu0 %2521, %v355_v42   ;;  %548 = vperm.xlu1 %2522, %v355_v42   ;;  %v351_v36 = vsub.f32 %v3074_v16, %v329_v30  ;;  %v361_v42 = vmul.f32 4.0, %v353_v58  ;;  %v3247_v13 = vrot.slane %v362_v3, %v3071_v15 }
  0xb5   :  { %v255_v31 = vsub.f32 %v3060_v11, %v239_v28  ;;  %v352_v32 = vsub.f32 %v3074_v16, %v333_v29  ;;  %v363_v16 = vld [vmem:[#allocation7] sm:$0x3] }
  0xb6   :  { %2349 = vmatpush3.bf16.msra.mxu0 %v2546_v45  ;;  %v359_v38 = vmul.f32 4.0, %v351_v36  ;;  %820 = vmatpush1.bf16.msra.mxu1 %v2566_v37  ;;  %v450_v45 = vsub.s32 1, %v3044_v7  ;;  %v3233_v47 = vrot.slane %v363_v16, %v3071_v15 }
  0xb7   :  { %2350 = vmatprep.subr.bf16.mxu0 %v2837_v0  ;;  %821 = vmatprep.subr.bf16.mxu1 %v2567_v39 }
  0xb8   :  { %503 = vperm.xlu0 %2521, %v356_v51   ;;  %2525 = vset.pattern.permute.xlu1 %v2839_v1 }
  0xb9   :  { %508 = vperm.xlu1 %2525, %v357_v56  }
  0xba   :  { %2351 = vmatpush3.bf16.msra.mxu0 %v2547_v53  ;;  %822 = vmatpush1.bf16.msra.mxu1 %v2569_v40 }
  0xbb   :  { %971 = vmatprep.subr.bf16.mxu0 %v3151_v63  ;;  %823 = vmatprep.subr.bf16.mxu1 %v2570_v43 }
  0xbc   :  { %2523 = vset.pattern.permute.xlu0 %v2841_v41 }
  0xbd   :  { %2353 = vmatmul.mubr.bf16.vlgmr.msra.gmra.mrb[0].mxu0 %v619_v59  ;;  %552 = vperm.xlu0 %2523, %v356_v51  }
  0xbe   :  { %1003 = vmatprep.mubr.bf16.mxu0 %v2839_v1  ;;  %2526 = vset.pattern.permute.xlu1 %v2841_v41 }
  0xbf   :  { %556 = vperm.xlu1 %2526, %v357_v56   ;;  %972 = vmatpush1.bf16.msra.mxu0 %v3149_v62 }
  0xc0   :  { %973 = vmatprep.subr.bf16.mxu0 %v3157_v4  ;;  %824 = vmatpush1.bf16.msra.mxu1 %v2572_v44 }
  0xc1   :  { %2524 = vset.pattern.permute.xlu0 %v2839_v1  ;;  %2356 = vmatprep.subr.bf16.mxu1 %v2837_v0 }
  0xc2   :  { %371 = vperm.xlu0 %2524, %v249_v2  }
  0xc3   :  { %417 = vperm.xlu1 %2526, %v3097_v26   ;;  %974 = vmatpush1.bf16.msra.mxu0 %v3162_v8  ;;  %v252_v26 = vsub.f32 %v3060_v11, %v227_v21  ;;  %v360_v11 = vmul.f32 4.0, %v352_v32  ;;  %v3263_v32 = vld [vmem:[%s3557_s4] ss:$0 sm:$0xff] }
  0xc4   :  { %1076 = vmatprep.subr.bf16.mxu0 %v2557_v23  ;;  %v3253_v23 = vrot.slane %v362_v3, %v450_v45 }
  0xc6   :  { %376 = vperm.xlu0 %2524, %v250_v10  }
  0xc7   :  { %421 = vperm.xlu1 %2526, %v249_v2  }
  0xca   :  { %2528 = vset.pattern.permute.xlu0 %v2841_v41 }
  0xcb   :  { %2527 = vset.pattern.permute.xlu1 %v2839_v1  ;;  %425 = vperm.xlu0 %2528, %v250_v10  }
  0xcc   :  { %381 = vperm.xlu1 %2527, %v251_v18  }
  0xcf   :  { %560 = vperm.xlu0 %2528, %v358_v20  }
  0xd0   :  { %2529 = vset.pattern.permute.xlu1 %v2841_v41 }
  0xd1   :  { %429 = vperm.xlu1 %2529, %v251_v18  }
  0xd3   :  { %2533 = vset.pattern.permute.xlu0 %v2839_v1 }
  0xd4   :  { %391 = vperm.xlu0 %2533, %v253_v27  }
  0xd5   :  { %2530 = vset.pattern.permute.xlu1 %v2839_v1 }
  0xd6   :  { %386 = vperm.xlu1 %2530, %v252_v26  }
  0xd8   :  { %513 = vperm.xlu0 %2533, %v358_v20  }
  0xda   :  { %2531 = vset.pattern.permute.xlu1 %v2841_v41 }
  0xdb   :  { %433 = vperm.xlu1 %2531, %v252_v26  }
  0xdc   :  { %401 = vperm.xlu0 %2533, %v255_v31  }
  0xdf   :  { %437 = vperm.xlu1 %2531, %v253_v27  }
  0xe0   :  { %523 = vperm.xlu0 %2533, %v360_v11  }
  0xe3   :  { %2532 = vset.pattern.permute.xlu1 %v2839_v1 }
  0xe4   :  { %518 = vperm.xlu1 %2532, %v359_v38   ;;  %2538 = vset.pattern.permute.xlu0 %v2841_v41 }
  0xe5   :  { %568 = vperm.xlu0 %2538, %v360_v11  }
  0xe8   :  { %2534 = vset.pattern.permute.xlu1 %v2841_v41 }
  0xe9   :  { %564 = vperm.xlu1 %2534, %v359_v38  }
  0xed   :  { %2535 = vset.pattern.permute.xlu1 %v2839_v1 }
  0xee   :  { %396 = vperm.xlu1 %2535, %v3132_v52  }
  0xf2   :  { %2536 = vset.pattern.permute.xlu1 %v2841_v41 }
  0xf3   :  { %441 = vperm.xlu1 %2536, %v3132_v52   ;;  %v3239_v52 = vld [vmem:[#allocation8] ss:$0 sm:$0xff] }
  0xf7   :  { %445 = vperm.xlu1 %2536, %v255_v31  }
  0xfb   :  { %2537 = vset.pattern.permute.xlu1 %v2839_v1 }
  0xfc   :  { %528 = vperm.xlu1 %2537, %v361_v42  }
 0x100   :  { %2539 = vset.pattern.permute.xlu1 %v2841_v41  ;;  %v3235_v41 = vrot.slane %v363_v16, %v450_v45 }
 0x101   :  { %572 = vperm.xlu1 %2539, %v361_v42  }
 0x12a   :  { %v367_v46 = vpop.permute.xlu1 %366 }
 0x12b   :  { %v408_v15 = vmul.f32 %v3247_v13, %v367_v46 }
 0x12f   :  { %v494_v48 = vpop.permute.xlu0 %493  ;;  %v545_v49 = vpop.permute.xlu1 %544 }
 0x130   :  { %v535_v50 = vmul.f32 %v3233_v47, %v494_v48  ;;  %v579_v51 = vmul.f32 %v3235_v41, %v545_v49 }
 0x132   :  { %v587_v53 = vadd.f32 %v579_v51, %v535_v50 }
 0x133   :  { %v499_v54 = vpop.permute.xlu0 %498  ;;  %v549_v55 = vpop.permute.xlu1 %548 }
 0x134   :  { %v536_v56 = vmul.f32 %v3233_v47, %v499_v54  ;;  %v602_v7 = vadd.f32 %v3239_v52, %v587_v53  ;;  %v580_v57 = vmul.f32 %v3235_v41, %v549_v55 }
 0x136   :  { %v588_v58 = vadd.f32 %v580_v57, %v536_v56  ;;  %v610_v60 = vmax.f32 %v602_v7, 0.0 }
 0x137   :  { %v504_v59 = vpop.permute.xlu0 %503 }
 0x138   :  { %v603_v61 = vadd.f32 %v3239_v52, %v588_v58  ;;  %v509_v2 = vpop.permute.xlu1 %508  ;;  %v537_v6 = vmul.f32 %v3233_v47, %v504_v59 }
 0x139   :  { %v538_v17 = vmul.f32 %v3233_v47, %v509_v2 }
 0x13a   :  { %v611_v5 = vmax.f32 %v603_v61, 0.0 }
 0x13c   :  { %v553_v10 = vpop.permute.xlu0 %552  ;;  %v926_v14 = vpack.c.bf16 %v611_v5, %v610_v60 }
 0x13d   :  { %v581_v18 = vmul.f32 %v3235_v41, %v553_v10 }
 0x13e   :  { %v557_v20 = vpop.permute.xlu1 %556  ;;  %2252 = vmatmul.mubr.msk.bf16.vlgmr.msra.gmra.mrb[4].mxu0 %vm958_vm1, %v926_v14 }
 0x13f   :  { %v589_v21 = vadd.f32 %v581_v18, %v537_v6  ;;  %v582_v22 = vmul.f32 %v3235_v41, %v557_v20  ;;  %1013 = vmatprep.mubr.bf16.mxu0 %v2839_v1  ;;  %1077 = vmatpush1.bf16.msra.mxu0 %v2555_v12 }
 0x140   :  { %1078 = vmatprep.subr.bf16.mxu0 %v2560_v19 }
 0x141   :  { %v604_v25 = vadd.f32 %v3239_v52, %v589_v21  ;;  %v590_v26 = vadd.f32 %v582_v22, %v538_v17  ;;  %v372_v27 = vpop.permute.xlu0 %371 }
 0x142   :  { %v418_v28 = vpop.permute.xlu1 %417  ;;  %v409_v35 = vmul.f32 %v3247_v13, %v372_v27 }
 0x143   :  { %v612_v29 = vmax.f32 %v604_v25, 0.0  ;;  %v605_v30 = vadd.f32 %v3239_v52, %v590_v26  ;;  %v452_v31 = vmul.f32 %v3253_v23, %v418_v28  ;;  %1079 = vmatpush1.bf16.msra.mxu0 %v2558_v24 }
 0x144   :  { %2416 = vmatprep.subr.bf16.mxu0 %v2837_v0 }
 0x145   :  { %v613_v33 = vmax.f32 %v605_v30, 0.0  ;;  %v460_v34 = vadd.f32 %v452_v31, %v408_v15  ;;  %v377_v36 = vpop.permute.xlu0 %376 }
 0x146   :  { %v422_v11 = vpop.permute.xlu1 %421  ;;  %v410_v42 = vmul.f32 %v3247_v13, %v377_v36 }
 0x147   :  { %v927_v37 = vpack.c.bf16 %v613_v33, %v612_v29  ;;  %v475_v38 = vadd.f32 %v3263_v32, %v460_v34  ;;  %v453_v39 = vmul.f32 %v3253_v23, %v422_v11 }
 0x149   :  { %v461_v40 = vadd.f32 %v453_v39, %v409_v35  ;;  %2253 = vmatmul.mubr.msk.bf16.gmra.mrb[8].mxu0 %vm958_vm1, %v927_v37  ;;  %v483_v44 = vmax.f32 %v475_v38, 0.0 }
 0x14a   :  { %v426_v43 = vpop.permute.xlu0 %425  ;;  %1108 = vmatprep.mubr.bf16.mxu0 %v2839_v1 }
 0x14b   :  { %v476_v16 = vadd.f32 %v3263_v32, %v461_v40  ;;  %v382_v45 = vpop.permute.xlu1 %381  ;;  %v454_v46 = vmul.f32 %v3253_v23, %v426_v43  ;;  %v2222_v43 = vld [vmem:[#allocation10] ss:$0 sm:$0xff] }
 0x14c   :  { %v411_v51 = vmul.f32 %v3247_v13, %v382_v45 }
 0x14d   :  { %v484_v48 = vmax.f32 %v476_v16, 0.0  ;;  %v462_v49 = vadd.f32 %v454_v46, %v410_v42 }
 0x14e   :  { %v561_v7 = vpop.permute.xlu0 %560 }
 0x14f   :  { %v922_v50 = vpack.c.bf16 %v484_v48, %v483_v44  ;;  %v477_v54 = vadd.f32 %v3263_v32, %v462_v49  ;;  %v2574_v49 = vld [vmem:[%s3562_s9 + $0x20] ss:$12 sps:$4 sm:$0xff]  }
 0x150   :  { %v430_v53 = vpop.permute.xlu1 %429 }
 0x151   :  { %v455_v55 = vmul.f32 %v3253_v23, %v430_v53  ;;  %2260 = vmatmul.mubr.msk.bf16.vlgmr.msra.gmra.mrb[4].mxu0 %vm958_vm1, %v922_v50  ;;  %v485_v57 = vmax.f32 %v477_v54, 0.0  ;;  %v583_v50 = vmul.f32 %v3235_v41, %v561_v7  ;;  %v2576_v7 = vld [vmem:[%s3562_s9 + $0x50] ss:$12 sps:$4 sm:$0xff]  }
 0x152   :  { %1118 = vmatprep.mubr.bf16.mxu0 %v2839_v1 }
 0x153   :  { %v463_v56 = vadd.f32 %v455_v55, %v411_v51  ;;  %v392_v5 = vpop.permute.xlu0 %391  ;;  %v2575_v51 = vld [vmem:[%s3562_s9 + $0x38] ss:$12 sps:$4 sm:$0xff]  }
 0x154   :  { %v413_v12 = vmul.f32 %v3247_v13, %v392_v5 }
 0x155   :  { %v478_v58 = vadd.f32 %v3263_v32, %v463_v56  ;;  %v387_v59 = vpop.permute.xlu1 %386 }
 0x156   :  { %v412_v2 = vmul.f32 %v3247_v13, %v387_v59 }
 0x157   :  { %v486_v60 = vmax.f32 %v478_v58, 0.0  ;;  %v514_v27 = vpop.permute.xlu0 %513 }
 0x158   :  { %v539_v53 = vmul.f32 %v3233_v47, %v514_v27 }
 0x159   :  { %v923_v61 = vpack.c.bf16 %v486_v60, %v485_v57 }
 0x15a   :  { %v434_v3 = vpop.permute.xlu1 %433  ;;  %v591_v58 = vadd.f32 %v583_v50, %v539_v53 }
 0x15b   :  { %2261 = vmatmul.mubr.msk.bf16.gmra.mrb[8].mxu0 %vm958_vm1, %v923_v61  ;;  %v456_v6 = vmul.f32 %v3253_v23, %v434_v3  ;;  %v402_v31 = vpop.permute.xlu0 %401 }
 0x15c   :  { %1128 = vmatprep.mubr.bf16.mxu0 %v2839_v1  ;;  %v415_v34 = vmul.f32 %v3247_v13, %v402_v31 }
 0x15d   :  { %v464_v10 = vadd.f32 %v456_v6, %v412_v2  ;;  %v606_v2 = vadd.f32 %v3239_v52, %v591_v58 }
 0x15e   :  { %v438_v14 = vpop.permute.xlu1 %437 }
 0x15f   :  { %v479_v17 = vadd.f32 %v3263_v32, %v464_v10  ;;  %v457_v18 = vmul.f32 %v3253_v23, %v438_v14  ;;  %v524_v54 = vpop.permute.xlu0 %523 }
 0x160   :  { %v541_v3 = vmul.f32 %v3233_v47, %v524_v54 }
 0x161   :  { %v465_v19 = vadd.f32 %v457_v18, %v413_v12  ;;  %v487_v20 = vmax.f32 %v479_v17, 0.0  ;;  %v614_v17 = vmax.f32 %v606_v2, 0.0 }
 0x163   :  { %v519_v21 = vpop.permute.xlu1 %518  ;;  %v480_v22 = vadd.f32 %v3263_v32, %v465_v19 }
 0x164   :  { %v540_v56 = vmul.f32 %v3233_v47, %v519_v21  ;;  %v569_v60 = vpop.permute.xlu0 %568 }
 0x165   :  { %v488_v24 = vmax.f32 %v480_v22, 0.0  ;;  %v585_v10 = vmul.f32 %v3235_v41, %v569_v60 }
 0x167   :  { %v924_v15 = vpack.c.bf16 %v488_v24, %v487_v20  ;;  %v593_v18 = vadd.f32 %v585_v10, %v541_v3 }
 0x168   :  { %v565_v25 = vpop.permute.xlu1 %564 }
 0x169   :  { %2262 = vmatmul.mubr.msk.bf16.gmra.mrb[12].mxu0 %vm958_vm1, %v924_v15  ;;  %v584_v57 = vmul.f32 %v3235_v41, %v565_v25 }
 0x16a   :  { %1138 = vmatprep.mubr.bf16.mxu0 %v2839_v1 }
 0x16b   :  { %v592_v59 = vadd.f32 %v584_v57, %v540_v56 }
 0x16d   :  { %v397_v26 = vpop.permute.xlu1 %396  ;;  %v607_v5 = vadd.f32 %v3239_v52, %v592_v59 }
 0x16e   :  { %v414_v28 = vmul.f32 %v3247_v13, %v397_v26 }
 0x16f   :  { %v615_v14 = vmax.f32 %v607_v5, 0.0 }
 0x172   :  { %v442_v29 = vpop.permute.xlu1 %441 }
 0x173   :  { %v458_v30 = vmul.f32 %v3253_v23, %v442_v29 }
 0x175   :  { %v466_v33 = vadd.f32 %v458_v30, %v414_v28 }
 0x176   :  { %v446_v35 = vpop.permute.xlu1 %445 }
 0x177   :  { %v481_v36 = vadd.f32 %v3263_v32, %v466_v33  ;;  %v459_v11 = vmul.f32 %v3253_v23, %v446_v35  ;;  %v2573_v23 = vld [vmem:[%s3562_s9 + $0x8] ss:$12 sps:$4 sm:$0xff]   ;;  %v2245_v35 = vld [vmem:[#allocation14] ss:$0 sm:$0xff] }
 0x179   :  { %v467_v37 = vadd.f32 %v459_v11, %v415_v34  ;;  %v489_v38 = vmax.f32 %v481_v36, 0.0  ;;  %v2246_v36 = vld [vmem:[%s3566_s13] ss:$0 sm:$0xff] }
 0x17b   :  { %v482_v39 = vadd.f32 %v3263_v32, %v467_v37  ;;  %v529_v55 = vpop.permute.xlu1 %528 }
 0x17c   :  { %v542_v6 = vmul.f32 %v3233_v47, %v529_v55  ;;  %v608_v47 = vadd.f32 %v3239_v52, %v593_v18 }
 0x17d   :  { %v490_v40 = vmax.f32 %v482_v39, 0.0 }
 0x17f   :  { %v925_v42 = vpack.c.bf16 %v490_v40, %v489_v38 }
 0x180   :  { %v573_v61 = vpop.permute.xlu1 %572 }
 0x181   :  { %2263 = vmatmul.mubr.msk.bf16.gmra.mrb[16].mxu0 %vm958_vm1, %v925_v42  ;;  %v586_v12 = vmul.f32 %v3235_v41, %v573_v61 }
 0x182   :  { %2418 = vmatprep.mubr.msk.bf16.mxu0 %vm2838_vm0, %v2837_v0 }
 0x183   :  { %v594_v19 = vadd.f32 %v586_v12, %v542_v6 }
 0x185   :  { %v609_v20 = vadd.f32 %v3239_v52, %v594_v19 }
 0x187   :  { %v617_v41 = vmax.f32 %v609_v20, 0.0 }
 0x190   :  { %v725_v44 = vpop.f32.mrb[0].mxu0 }
 0x191   :  { %v726_v16 = vadd.f32 %v2222_v43, %v725_v44  ;;  %v2354_v13 = vpop.f32.mrb[1].mxu0 }
 0x192   :  { %v728_v45 = vpop.f32.mrb[2].mxu0 }
 0x193   :  { %v731_v46 = vmax.f32 %v726_v16, 0.0  ;;  %v2355_v48 = vpop.f32.mrb[3].mxu0 }
 0x195   :  { %v732_v32 = vpack.c.bf16 %v731_v46, %v731_v46 }
 0x197   :  { %2243 = vmatmul.mubr.msk.bf16.vlgmr.msra.gmra.mrb[0].mxu1 %vm813_vm2, %v732_v32 }
 0x198   :  { %2357 = vmatpush3.bf16.msra.mxu1 %v2573_v23  ;;  %2364 = vmatprep.mubr.msk.bf16.mxu1 %vm2838_vm0, %v2837_v0 }
 0x199   :  { %2358 = vmatprep.subr.bf16.mxu1 %v2837_v0 }
 0x19c   :  { %2359 = vmatpush3.bf16.msra.mxu1 %v2574_v49  ;;  %v2247_v49 = vld [vmem:[%s3567_s14] ss:$0 sm:$0xff] }
 0x19d   :  { %2360 = vmatprep.subr.bf16.mxu1 %v2837_v0 }
 0x1a0   :  { %2361 = vmatpush3.bf16.msra.mxu1 %v2575_v51 }
 0x1a1   :  { %2362 = vmatprep.subr.bf16.mxu1 %v2837_v0 }
 0x1a4   :  { %2363 = vmatpush3.bf16.msra.mxu1 %v2576_v7 }
 0x1a5   :  { %2484 = vmatprep.subr.bf16.mxu1 %v3151_v63  ;;  %v928_v63 = vpack.c.bf16 %v615_v14, %v614_v17 }
 0x1a7   :  { %2365 = vmatmul.mubr.msk.bf16.vlgmr.msra.gmra.mrb[4].mxu1 %vm813_vm2, %v732_v32 }
 0x1a8   :  { %2486 = vmatpush1.bf16.msra.mxu1 %v3149_v62  ;;  %1023 = vmatprep.mubr.bf16.mxu1 %v2839_v1  ;;  %v616_v62 = vmax.f32 %v608_v47, 0.0 }
 0x1a9   :  { %2485 = vmatprep.subr.bf16.mxu1 %v3157_v4 }
 0x1aa   :  { %v929_v21 = vpack.c.bf16 %v617_v41, %v616_v62 }
 0x1ac   :  { %2487 = vmatpush1.bf16.msra.mxu1 %v3162_v8 }
 0x1ad   :  { %2368 = vmatprep.subr.bf16.mxu1 %v2837_v0 }
 0x1af   :  { %2254 = vmatmul.mubr.msk.bf16.vlgmr.msra.gmra.mrb[8].mxu1 %vm958_vm1, %v928_v63 }
 0x1b0   :  { %1033 = vmatprep.mubr.bf16.mxu1 %v2839_v1 }
 0x1b7   :  { %2255 = vmatmul.mubr.msk.bf16.gmra.mrb[12].mxu1 %vm958_vm1, %v929_v21 }
 0x1b8   :  { %2370 = vmatprep.mubr.msk.bf16.mxu1 %vm2838_vm0, %v2837_v0 }
 0x224   :  { %v1110_v4 = vpop.f32.mrb[4].mxu0 }
 0x225   :  { %v1112_v8 = vpop.f32.mrb[5].mxu0 }
 0x226   :  { %v1114_v22 = vpop.f32.mrb[6].mxu0 }
 0x227   :  { %v1116_v24 = vpop.f32.mrb[7].mxu0 }
 0x22e   :  { %v1120_v15 = vpop.f32.mrb[8].mxu0 }
 0x22f   :  { %v1122_v52 = vpop.f32.mrb[9].mxu0 }
 0x230   :  { %v1124_v25 = vpop.f32.mrb[10].mxu0 }
 0x231   :  { %v1126_v26 = vpop.f32.mrb[11].mxu0 }
 0x23c   :  { %v1130_v27 = vpop.f32.mrb[12].mxu0 }
 0x23d   :  { %v1132_v28 = vpop.f32.mrb[13].mxu0 }
 0x23e   :  { %v3341_v29 = vpop.f32.mrb[14].mxu0 }
 0x23f   :  { %v3343_v1 = vpop.f32.mrb[15].mxu0 }
 0x254   :  { %v3345_v30 = vpop.f32.mrb[16].mxu0 }
 0x255   :  { %v3347_v31 = vpop.f32.mrb[17].mxu0 }
 0x256   :  { %v3349_v33 = vpop.f32.mrb[18].mxu0 }
 0x257   :  { %v3351_v34 = vpop.f32.mrb[19].mxu0 }
 0x26a   :  { %v851_v11 = vpop.f32.mrb[0].mxu1 }
 0x26b   :  { %v3356_v37 = vadd.f32 %v2245_v35, %v851_v11  ;;  %v853_v38 = vpop.f32.mrb[1].mxu1 }
 0x26c   :  { %v3358_v39 = vadd.f32 %v2246_v36, %v853_v38  ;;  %v855_v40 = vpop.f32.mrb[2].mxu1 }
 0x26d   :  { %v856_v42 = vpop.f32.mrb[3].mxu1  ;;  %v1173_v45 = vrot.slane %v3356_v37, %v3051_v9 }
 0x26e   :  { %v1149_v43 = vadd.f32 %v1110_v4, %v3358_v39  ;;  %v1150_v44 = vadd.f32 %v1114_v22, %v3358_v39  ;;  %v1151_v16 = vadd.f32 %v1120_v15, %v3358_v39  ;;  %v1152_v13 = vadd.f32 %v1124_v25, %v3358_v39 }
 0x26f   :  { %v1189_v48 = vrot.slane %v1173_v45, %v3051_v9  ;;  %v1181_v23 = vcombine.high %v1173_v45, %v1173_v45 }
 0x270   :  { %v1231_v46 = vpack.c.bf16 %v1149_v43, %v1149_v43  ;;  %v1232_v50 = vpack.c.bf16 %v1150_v44, %v1150_v44  ;;  %v1233_v6 = vpack.c.bf16 %v1151_v16, %v1151_v16  ;;  %v1234_v25 = vpack.c.bf16 %v1152_v13, %v1152_v13 }
 0x271   :  { %v1223_v32 = vpack.c.bf16 %v1189_v48, %v1189_v48  ;;  %v1203_v53 = vrot.slane %v1181_v23, %v3051_v9  ;;  %v1211_v18 = vcombine.high %v1189_v48, %v1189_v48 }
 0x272   :  { %2369 = vmatpush3.bf16.xpose.msra.mxu1 %v1231_v46 }
 0x273   :  { %2374 = vmatprep.subr.bf16.mxu1 %v2837_v0  ;;  %v1224_v61 = vpack.c.bf16 %v1203_v53, %v1203_v53  ;;  %v1225_v22 = vpack.c.bf16 %v1211_v18, %v1211_v18  ;;  %v1213_v36 = vcombine.high %v1203_v53, %v1203_v53 }
 0x275   :  { %v1226_v45 = vpack.c.bf16 %v1213_v36, %v1213_v36 }
 0x279   :  { %2371 = vmatmul.mubr.bf16.vlgmr.msra.gmra.mrb[16].mxu1 %v1223_v32 }
 0x27a   :  { %v892_v51 = vpop.f32.mrb[4].mxu1  ;;  %2375 = vmatpush3.bf16.xpose.msra.mxu1 %v1232_v50  ;;  %2376 = vmatprep.mubr.msk.bf16.mxu1 %vm2838_vm0, %v2837_v0 }
 0x27b   :  { %v3374_v54 = vadd.f32 %v2247_v49, %v892_v51  ;;  %v2366_v55 = vpop.f32.mrb[5].mxu1  ;;  %2380 = vmatprep.subr.bf16.mxu1 %v2837_v0 }
 0x27c   :  { %v895_v56 = vpop.f32.mrb[6].mxu1 }
 0x27d   :  { %v2367_v57 = vpop.f32.mrb[7].mxu1  ;;  %v1157_v58 = vadd.f32 %v1112_v8, %v3374_v54  ;;  %v3379_v7 = vadd.f32 %v1116_v24, %v3374_v54  ;;  %v1159_v59 = vadd.f32 %v1122_v52, %v3374_v54  ;;  %v1160_v60 = vadd.f32 %v1126_v26, %v3374_v54 }
 0x27f   :  { %v1664_v2 = vpack.c.bf16 %v1157_v58, %v1157_v58  ;;  %v1666_v3 = vpack.c.bf16 %v1159_v59, %v1159_v59  ;;  %v1667_v5 = vpack.c.bf16 %v1160_v60, %v1160_v60  ;;  %v1665_v58 = vpack.c.bf16 %v3379_v7, %v3379_v7 }
 0x281   :  { %2377 = vmatmul.mubr.bf16.vlgmr.msra.gmra.mrb[20].mxu1 %v1224_v61  ;;  %v1678_v10 = vsel %vm1676_vm3, %v1664_v2, 0  ;;  %v3385_v12 = vsel %vm1676_vm3, %v1666_v3, 0  ;;  %v3388_v14 = vsel %vm1676_vm3, %v1667_v5, 0  ;;  %v1724_v60 = vsel %vm1676_vm3, %v1665_v58, 0 }
 0x282   :  { %v1025_v17 = vpop.f32.mrb[8].mxu1  ;;  %2417 = vmatpush3.bf16.msra.mxu0 %v1678_v10  ;;  %2381 = vmatpush3.bf16.xpose.msra.mxu1 %v1233_v6 }
 0x283   :  { %v1131_v19 = vadd.f32 %v1130_v27, %v1025_v17  ;;  %v1027_v63 = vpop.f32.mrb[9].mxu1  ;;  %2382 = vmatprep.mubr.msk.bf16.mxu1 %vm2838_vm0, %v2837_v0  ;;  %2386 = vmatprep.subr.bf16.mxu1 %v2837_v0 }
 0x284   :  { %v1133_v47 = vadd.f32 %v1132_v28, %v1027_v63  ;;  %v1029_v20 = vpop.f32.mrb[10].mxu1  ;;  %2428 = vmatprep.subr.bf16.mxu0 %v2837_v0 }
 0x285   :  { %v1153_v62 = vadd.f32 %v1131_v19, %v3358_v39  ;;  %v1135_v41 = vadd.f32 %v3341_v29, %v1029_v20  ;;  %v1031_v21 = vpop.f32.mrb[11].mxu1  ;;  %v1166_v29 = vcombine.high %v3356_v37, %v3356_v37 }
 0x286   :  { %v1161_v4 = vadd.f32 %v1133_v47, %v3374_v54  ;;  %v1137_v8 = vadd.f32 %v3343_v1, %v1031_v21 }
 0x287   :  { %v1154_v24 = vadd.f32 %v1135_v41, %v3358_v39  ;;  %v1235_v46 = vpack.c.bf16 %v1153_v62, %v1153_v62 }
 0x288   :  { %v1668_v15 = vpack.c.bf16 %v1161_v4, %v1161_v4  ;;  %v1162_v52 = vadd.f32 %v1137_v8, %v3374_v54 }
 0x289   :  { %2383 = vmatmul.mubr.bf16.vlgmr.msra.gmra.mrb[24].mxu1 %v1225_v22  ;;  %v1236_v50 = vpack.c.bf16 %v1154_v24, %v1154_v24 }
 0x28a   :  { %v1669_v26 = vpack.c.bf16 %v1162_v52, %v1162_v52  ;;  %v1035_v27 = vpop.f32.mrb[12].mxu1  ;;  %2387 = vmatpush3.bf16.xpose.msra.mxu1 %v1234_v25  ;;  %2388 = vmatprep.mubr.msk.bf16.mxu1 %vm2838_vm0, %v2837_v0  ;;  %v3403_v28 = vsel %vm1676_vm3, %v1668_v15, 0 }
 0x28b   :  { %v1141_v1 = vadd.f32 %v3345_v30, %v1035_v27  ;;  %v1037_v35 = vpop.f32.mrb[13].mxu1  ;;  %2392 = vmatprep.subr.bf16.mxu1 %v2837_v0  ;;  %v1180_v30 = vrot.slane %v1166_v29, %v3051_v9 }
 0x28c   :  { %v1143_v11 = vadd.f32 %v3347_v31, %v1037_v35  ;;  %v1039_v38 = vpop.f32.mrb[14].mxu1  ;;  %v3411_v40 = vsel %vm1676_vm3, %v1669_v26, 0 }
 0x28d   :  { %v1155_v42 = vadd.f32 %v1141_v1, %v3358_v39  ;;  %v1145_v43 = vadd.f32 %v3349_v33, %v1039_v38  ;;  %v1041_v44 = vpop.f32.mrb[15].mxu1  ;;  %v1182_v32 = vcombine.high %v1180_v30, %v1180_v30 }
 0x28e   :  { %v1163_v16 = vadd.f32 %v1143_v11, %v3374_v54  ;;  %v1147_v37 = vadd.f32 %v3351_v34, %v1041_v44  ;;  %v1196_v34 = vrot.slane %v1180_v30, %v3051_v9 }
 0x28f   :  { %v1156_v13 = vadd.f32 %v1145_v43, %v3358_v39  ;;  %v1210_v51 = vrot.slane %v1182_v32, %v3051_v9 }
 0x290   :  { %v1670_v31 = vpack.c.bf16 %v1163_v16, %v1163_v16  ;;  %v1164_v48 = vadd.f32 %v1147_v37, %v3374_v54  ;;  %v1227_v49 = vpack.c.bf16 %v1196_v34, %v1196_v34  ;;  %v1237_v54 = vpack.c.bf16 %v1155_v42, %v1155_v42 }
 0x291   :  { %2389 = vmatmul.mubr.bf16.vlgmr.msra.gmra.mrb[28].mxu1 %v1226_v45  ;;  %v1228_v53 = vpack.c.bf16 %v1210_v51, %v1210_v51  ;;  %v1212_v55 = vcombine.high %v1196_v34, %v1196_v34  ;;  %v1238_v57 = vpack.c.bf16 %v1156_v13, %v1156_v13  ;;  %v1214_v9 = vcombine.high %v1210_v51, %v1210_v51 }
 0x292   :  { %v1671_v23 = vpack.c.bf16 %v1164_v48, %v1164_v48  ;;  %2393 = vmatpush3.bf16.xpose.msra.mxu1 %v1235_v46  ;;  %2394 = vmatprep.mubr.msk.bf16.mxu1 %vm2838_vm0, %v2837_v0  ;;  %v3423_v33 = vsel %vm1676_vm3, %v1670_v31, 0 }
 0x293   :  { %2398 = vmatprep.subr.bf16.mxu1 %v2837_v0  ;;  %v1229_v56 = vpack.c.bf16 %v1212_v55, %v1212_v55  ;;  %v1230_v59 = vpack.c.bf16 %v1214_v9, %v1214_v9 }
 0x294   :  { %v3428_v39 = vsel %vm1676_vm3, %v1671_v23, 0 }
 0x299   :  { %2395 = vmatmul.mubr.bf16.vlgmr.msra.gmra.mrb[32].mxu1 %v1227_v49 }
 0x29a   :  { %2399 = vmatpush3.bf16.xpose.msra.mxu1 %v1236_v50  ;;  %2400 = vmatprep.mubr.msk.bf16.mxu1 %vm2838_vm0, %v2837_v0 }
 0x29b   :  { %2404 = vmatprep.subr.bf16.mxu1 %v2837_v0 }
 0x2a1   :  { %2401 = vmatmul.mubr.bf16.vlgmr.msra.gmra.mrb[36].mxu1 %v1228_v53 }
 0x2a2   :  { %2405 = vmatpush3.bf16.xpose.msra.mxu1 %v1237_v54  ;;  %2406 = vmatprep.mubr.msk.bf16.mxu1 %vm2838_vm0, %v2837_v0 }
 0x2a3   :  { %2410 = vmatprep.subr.bf16.mxu1 %v2837_v0 }
 0x2a9   :  { %2407 = vmatmul.mubr.bf16.vlgmr.msra.gmra.mrb[40].mxu1 %v1229_v56 }
 0x2aa   :  { %2411 = vmatpush3.bf16.xpose.msra.mxu1 %v1238_v57  ;;  %2412 = vmatprep.mubr.msk.bf16.mxu1 %vm2838_vm0, %v2837_v0 }
 0x2ab   :  { %2422 = vmatprep.subr.bf16.mxu1 %v2837_v0 }
 0x2b1   :  { %2413 = vmatmul.mubr.bf16.vlgmr.msra.gmra.mrb[44].mxu1 %v1230_v59 }
 0x2b2   :  { %2423 = vmatpush3.bf16.msra.mxu1 %v1724_v60  ;;  %2424 = vmatprep.mubr.msk.bf16.mxu1 %vm2838_vm0, %v2837_v0 }
 0x2b3   :  { %2434 = vmatprep.subr.bf16.mxu1 %v2837_v0 }
 0x34c   :  { %v1273_v61 = vpop.f32.mrb[16].mxu1 }
 0x34d   :  { %v1559_v2 = vmul.f32 0.088388346, %v1273_v61  ;;  %v2372_v3 = vpop.f32.mrb[17].mxu1 }
 0x34e   :  { %v1276_v5 = vpop.f32.mrb[18].mxu1 }
 0x34f   :  { %v2373_v6 = vpop.f32.mrb[19].mxu1  ;;  %v1568_v10 = vsel %vm1567_vm4, %v1559_v2, -inf }
 0x350   :  { %1569 = vmax.xlane.f32.xlu1 %v1568_v10 }
 0x354   :  { %v1313_v7 = vpop.f32.mrb[20].mxu1 }
 0x355   :  { %v1560_v17 = vmul.f32 0.088388346, %v1313_v7  ;;  %v2378_v18 = vpop.f32.mrb[21].mxu1 }
 0x356   :  { %v1316_v19 = vpop.f32.mrb[22].mxu1 }
 0x357   :  { %v2379_v63 = vpop.f32.mrb[23].mxu1  ;;  %v1571_v47 = vsel %vm1567_vm4, %v1560_v17, -inf }
 0x358   :  { %1572 = vmax.xlane.f32.xlu0 %v1571_v47 }
 0x35c   :  { %v1353_v20 = vpop.f32.mrb[24].mxu1 }
 0x35d   :  { %v1561_v62 = vmul.f32 0.088388346, %v1353_v20  ;;  %v2384_v41 = vpop.f32.mrb[25].mxu1 }
 0x35e   :  { %v1356_v21 = vpop.f32.mrb[26].mxu1 }
 0x35f   :  { %v2385_v4 = vpop.f32.mrb[27].mxu1  ;;  %v1574_v8 = vsel %vm1567_vm4, %v1561_v62, -inf }
 0x360   :  { %1575 = vmax.xlane.f32.xlu0 %v1574_v8 }
 0x364   :  { %v1393_v22 = vpop.f32.mrb[28].mxu1 }
 0x365   :  { %v1562_v24 = vmul.f32 0.088388346, %v1393_v22  ;;  %v2390_v15 = vpop.f32.mrb[29].mxu1 }
 0x366   :  { %v1396_v52 = vpop.f32.mrb[30].mxu1 }
 0x367   :  { %v2391_v25 = vpop.f32.mrb[31].mxu1  ;;  %v1577_v26 = vsel %vm1567_vm4, %v1562_v24, -inf }
 0x368   :  { %1578 = vmax.xlane.f32.xlu1 %v1577_v26 }
 0x36c   :  { %v1433_v27 = vpop.f32.mrb[32].mxu1 }
 0x36d   :  { %v1563_v29 = vmul.f32 0.088388346, %v1433_v27  ;;  %v2396_v1 = vpop.f32.mrb[33].mxu1 }
 0x36e   :  { %v1436_v35 = vpop.f32.mrb[34].mxu1 }
 0x36f   :  { %v2397_v36 = vpop.f32.mrb[35].mxu1  ;;  %v1580_v11 = vsel %vm1567_vm4, %v1563_v29, -inf }
 0x370   :  { %1581 = vmax.xlane.f32.xlu0 %v1580_v11 }
 0x374   :  { %v1473_v38 = vpop.f32.mrb[36].mxu1 }
 0x375   :  { %v1564_v42 = vmul.f32 0.088388346, %v1473_v38  ;;  %v2402_v43 = vpop.f32.mrb[37].mxu1 }
 0x376   :  { %v1476_v44 = vpop.f32.mrb[38].mxu1 }
 0x377   :  { %v2403_v16 = vpop.f32.mrb[39].mxu1  ;;  %v1583_v37 = vsel %vm1567_vm4, %v1564_v42, -inf }
 0x378   :  { %1584 = vmax.xlane.f32.xlu1 %v1583_v37 }
 0x37c   :  { %v1513_v30 = vpop.f32.mrb[40].mxu1 }
 0x37d   :  { %v1565_v13 = vmul.f32 0.088388346, %v1513_v30  ;;  %v2408_v45 = vpop.f32.mrb[41].mxu1 }
 0x37e   :  { %v1516_v46 = vpop.f32.mrb[42].mxu1 }
 0x37f   :  { %v2409_v31 = vpop.f32.mrb[43].mxu1  ;;  %v1586_v48 = vsel %vm1567_vm4, %v1565_v13, -inf }
 0x380   :  { %1587 = vmax.xlane.f32.xlu0 %v1586_v48 }
 0x384   :  { %v1553_v23 = vpop.f32.mrb[44].mxu1 }
 0x385   :  { %v1566_v34 = vmul.f32 0.088388346, %v1553_v23  ;;  %v2414_v32 = vpop.f32.mrb[45].mxu1 }
 0x386   :  { %v1556_v49 = vpop.f32.mrb[46].mxu1 }
 0x387   :  { %v2415_v50 = vpop.f32.mrb[47].mxu1  ;;  %v1589_v51 = vsel %vm1567_vm4, %v1566_v34, -inf }
 0x388   :  { %1590 = vmax.xlane.f32.xlu1 %v1589_v51 }
 0x3dd   :  { %v1570_v53 = vpop.xlane.xlu1 %1569 }
 0x3de   :  { %v1592_v54 = vsub.f32 %v1559_v2, %v1570_v53 }
 0x3e0   :  { %v1600_v55 = vmul.f32 1.442695, %v1592_v54 }
 0x3e2   :  { %2585 = vpow2.f32 %v1600_v55 }
 0x3e5   :  { %v1573_v56 = vpop.xlane.xlu0 %1572 }
 0x3e6   :  { %v1593_v57 = vsub.f32 %v1560_v17, %v1573_v56 }
 0x3e8   :  { %v1602_v9 = vmul.f32 1.442695, %v1593_v57 }
 0x3ea   :  { %2587 = vpow2.f32 %v1602_v9 }
 0x3ec   :  { %v2586_v58 = vpop.eup %2585 }
 0x3ed   :  { %v1576_v59 = vpop.xlane.xlu0 %1575  ;;  %v1616_v60 = vsel %vm1567_vm4, %v2586_v58, 0.0 }
 0x3ee   :  { %v1594_v61 = vsub.f32 %v1561_v62, %v1576_v59  ;;  %1617 = vadd.xlane.f32.xlu0 %v1616_v60 }
 0x3f0   :  { %v1604_v3 = vmul.f32 1.442695, %v1594_v61 }
 0x3f2   :  { %2589 = vpow2.f32 %v1604_v3  ;;  %v2578_v3 = vld [vmem:[%s3568_s15 + $0x8] sm:$0xff]  }
 0x3f4   :  { %v2588_v5 = vpop.eup %2587 }
 0x3f5   :  { %v1579_v6 = vpop.xlane.xlu1 %1578  ;;  %v1619_v10 = vsel %vm1567_vm4, %v2588_v5, 0.0 }
 0x3f6   :  { %v1595_v7 = vsub.f32 %v1562_v24, %v1579_v6  ;;  %1620 = vadd.xlane.f32.xlu1 %v1619_v10  ;;  %v2580_v6 = vld [vmem:[%s3568_s15 + $0x18] sm:$0xff]   ;;  %v2581_v10 = vld [vmem:[%s3568_s15 + $0x20] sm:$0xff]  }
 0x3f8   :  { %v1606_v2 = vmul.f32 1.442695, %v1595_v7  ;;  %v2582_v7 = vld [vmem:[%s3568_s15 + $0x28] sm:$0xff]  }
 0x3fa   :  { %2591 = vpow2.f32 %v1606_v2  ;;  %v2583_v2 = vld [vmem:[%s3568_s15 + $0x30] sm:$0xff]  }
 0x3fc   :  { %v2590_v18 = vpop.eup %2589 }
 0x3fd   :  { %v1582_v17 = vpop.xlane.xlu0 %1581  ;;  %v1622_v19 = vsel %vm1567_vm4, %v2590_v18, 0.0 }
 0x3fe   :  { %v1596_v63 = vsub.f32 %v1563_v29, %v1582_v17  ;;  %1623 = vadd.xlane.f32.xlu0 %v1622_v19 }
 0x400   :  { %v1608_v47 = vmul.f32 1.442695, %v1596_v63 }
 0x402   :  { %2593 = vpow2.f32 %v1608_v47 }
 0x404   :  { %v2592_v20 = vpop.eup %2591 }
 0x405   :  { %v1585_v62 = vpop.xlane.xlu1 %1584  ;;  %v1625_v41 = vsel %vm1567_vm4, %v2592_v20, 0.0 }
 0x406   :  { %v1597_v21 = vsub.f32 %v1564_v42, %v1585_v62  ;;  %1626 = vadd.xlane.f32.xlu1 %v1625_v41 }
 0x408   :  { %v1610_v4 = vmul.f32 1.442695, %v1597_v21 }
 0x40a   :  { %2595 = vpow2.f32 %v1610_v4 }
 0x40c   :  { %v2594_v8 = vpop.eup %2593 }
 0x40d   :  { %v1588_v22 = vpop.xlane.xlu0 %1587  ;;  %v1628_v24 = vsel %vm1567_vm4, %v2594_v8, 0.0 }
 0x40e   :  { %v1598_v15 = vsub.f32 %v1565_v13, %v1588_v22  ;;  %1629 = vadd.xlane.f32.xlu0 %v1628_v24 }
 0x410   :  { %v1612_v52 = vmul.f32 1.442695, %v1598_v15 }
 0x412   :  { %2597 = vpow2.f32 %v1612_v52 }
 0x414   :  { %v3459_v25 = vpop.eup %2595 }
 0x415   :  { %v1591_v26 = vpop.xlane.xlu1 %1590  ;;  %v1631_v27 = vsel %vm1567_vm4, %v3459_v25, 0.0 }
 0x416   :  { %v1599_v29 = vsub.f32 %v1566_v34, %v1591_v26  ;;  %1632 = vadd.xlane.f32.xlu1 %v1631_v27 }
 0x418   :  { %v1614_v1 = vmul.f32 1.442695, %v1599_v29 }
 0x41a   :  { %2599 = vpow2.f32 %v1614_v1 }
 0x41c   :  { %v3463_v35 = vpop.eup %2597 }
 0x41d   :  { %v1634_v36 = vsel %vm1567_vm4, %v3463_v35, 0.0 }
 0x41e   :  { %1635 = vadd.xlane.f32.xlu0 %v1634_v36 }
 0x424   :  { %v3467_v11 = vpop.eup %2599 }
 0x425   :  { %v1637_v38 = vsel %vm1567_vm4, %v3467_v11, 0.0 }
 0x426   :  { %1638 = vadd.xlane.f32.xlu1 %v1637_v38 }
 0x47b   :  { %v1618_v42 = vpop.xlane.xlu0 %1617 }
 0x47c   :  { %2601 = vrcp.f32 %v1618_v42 }
 0x483   :  { %v1621_v43 = vpop.xlane.xlu1 %1620 }
 0x484   :  { %2603 = vrcp.f32 %v1621_v43 }
 0x486   :  { %v2602_v44 = vpop.eup %2601 }
 0x487   :  { %v1648_v16 = vmul.f32 %v2602_v44, %v2586_v58 }
 0x489   :  { %v1656_v37 = vpack.c.bf16 %v1648_v16, %v1648_v16 }
 0x48b   :  { %2419 = vmatmul.mubr.msk.bf16.vlgmr.msra.gmra.mrb[20].mxu0 %vm1672_vm5, %v1656_v37  ;;  %v1624_v30 = vpop.xlane.xlu0 %1623 }
 0x48c   :  { %2429 = vmatpush3.bf16.msra.mxu0 %v3385_v12  ;;  %2605 = vrcp.f32 %v1624_v30  ;;  %2430 = vmatprep.mubr.msk.bf16.mxu0 %vm2838_vm0, %v2837_v0 }
 0x48d   :  { %2440 = vmatprep.subr.bf16.mxu0 %v2837_v0 }
 0x48e   :  { %v2604_v13 = vpop.eup %2603 }
 0x48f   :  { %v1649_v45 = vmul.f32 %v2604_v13, %v2588_v5  ;;  %v2579_v5 = vld [vmem:[%s3568_s15 + $0x10] sm:$0xff]  }
 0x491   :  { %v1657_v46 = vpack.c.bf16 %v1649_v45, %v1649_v45 }
 0x493   :  { %2425 = vmatmul.mubr.msk.bf16.vlgmr.msra.gmra.mrb[48].mxu1 %vm1672_vm5, %v1657_v46  ;;  %v1627_v31 = vpop.xlane.xlu1 %1626 }
 0x494   :  { %2435 = vmatpush3.bf16.msra.mxu1 %v3388_v14  ;;  %2607 = vrcp.f32 %v1627_v31  ;;  %2436 = vmatprep.mubr.msk.bf16.mxu1 %vm2838_vm0, %v2837_v0 }
 0x495   :  { %2446 = vmatprep.subr.bf16.mxu1 %v2837_v0 }
 0x496   :  { %v2606_v12 = vpop.eup %2605 }
 0x497   :  { %v1650_v48 = vmul.f32 %v2606_v12, %v2590_v18  ;;  %v2584_v18 = vld [vmem:[%s3568_s15 + $0x38] sm:$0xff]  }
 0x499   :  { %v1658_v23 = vpack.c.bf16 %v1650_v48, %v1650_v48 }
 0x49b   :  { %2431 = vmatmul.mubr.msk.bf16.vlgmr.msra.gmra.mrb[24].mxu0 %vm1672_vm5, %v1658_v23  ;;  %v1630_v34 = vpop.xlane.xlu0 %1629 }
 0x49c   :  { %2441 = vmatpush3.bf16.msra.mxu0 %v3403_v28  ;;  %2609 = vrcp.f32 %v1630_v34  ;;  %2442 = vmatprep.mubr.msk.bf16.mxu0 %vm2838_vm0, %v2837_v0 }
 0x49d   :  { %2452 = vmatprep.subr.bf16.mxu0 %v2837_v0 }
 0x49e   :  { %v2608_v14 = vpop.eup %2607 }
 0x49f   :  { %v1651_v32 = vmul.f32 %v2608_v14, %v2592_v20 }
 0x4a1   :  { %v1659_v49 = vpack.c.bf16 %v1651_v32, %v1651_v32 }
 0x4a3   :  { %2437 = vmatmul.mubr.msk.bf16.vlgmr.msra.gmra.mrb[52].mxu1 %vm1672_vm5, %v1659_v49  ;;  %v1633_v50 = vpop.xlane.xlu1 %1632 }
 0x4a4   :  { %2447 = vmatpush3.bf16.msra.mxu1 %v3411_v40  ;;  %2611 = vrcp.f32 %v1633_v50  ;;  %2448 = vmatprep.mubr.msk.bf16.mxu1 %vm2838_vm0, %v2837_v0 }
 0x4a5   :  { %2458 = vmatprep.subr.bf16.mxu1 %v2837_v0 }
 0x4a6   :  { %v2610_v28 = vpop.eup %2609 }
 0x4a7   :  { %v1652_v51 = vmul.f32 %v2610_v28, %v2594_v8 }
 0x4a9   :  { %v1660_v53 = vpack.c.bf16 %v1652_v51, %v1652_v51 }
 0x4ab   :  { %2443 = vmatmul.mubr.msk.bf16.vlgmr.msra.gmra.mrb[28].mxu0 %vm1672_vm5, %v1660_v53  ;;  %v1636_v54 = vpop.xlane.xlu0 %1635 }
 0x4ac   :  { %2453 = vmatpush3.bf16.msra.mxu0 %v3423_v33  ;;  %2613 = vrcp.f32 %v1636_v54  ;;  %2454 = vmatprep.mubr.msk.bf16.mxu0 %vm2838_vm0, %v2837_v0 }
 0x4ad   :  { %2464 = vmatprep.subr.bf16.mxu0 %v2837_v0 }
 0x4ae   :  { %v2612_v40 = vpop.eup %2611 }
 0x4af   :  { %v1653_v55 = vmul.f32 %v2612_v40, %v3459_v25 }
 0x4b1   :  { %v1661_v56 = vpack.c.bf16 %v1653_v55, %v1653_v55 }
 0x4b3   :  { %2449 = vmatmul.mubr.msk.bf16.vlgmr.msra.gmra.mrb[56].mxu1 %vm1672_vm5, %v1661_v56  ;;  %v1639_v57 = vpop.xlane.xlu1 %1638 }
 0x4b4   :  { %2615 = vrcp.f32 %v1639_v57  ;;  %2459 = vmatpush3.bf16.msra.mxu1 %v3428_v39  ;;  %2460 = vmatprep.mubr.msk.bf16.mxu1 %vm2838_vm0, %v2837_v0  ;;  %v2577_v39 = vld [vmem:[%s3568_s15] sm:$0xff]  }
 0x4b6   :  { %v2614_v33 = vpop.eup %2613 }
 0x4b7   :  { %v1654_v9 = vmul.f32 %v2614_v33, %v3463_v35 }
 0x4b9   :  { %v1662_v58 = vpack.c.bf16 %v1654_v9, %v1654_v9 }
 0x4bb   :  { %2455 = vmatmul.mubr.msk.bf16.vlgmr.msra.gmra.mrb[32].mxu0 %vm1672_vm5, %v1662_v58 }
 0x4bc   :  { %2480 = vmatprep.mubr.msk.bf16.mxu0 %vm2838_vm0, %v2837_v0  ;;  %2465 = vmatpush3.bf16.msra.mxu0 %v2577_v39 }
 0x4bd   :  { %2466 = vmatprep.subr.bf16.mxu0 %v2837_v0 }
 0x4be   :  { %v2616_v59 = vpop.eup %2615 }
 0x4bf   :  { %v1655_v60 = vmul.f32 %v2616_v59, %v3467_v11 }
 0x4c0   :  { %2467 = vmatpush3.bf16.msra.mxu0 %v2578_v3 }
 0x4c1   :  { %v1663_v61 = vpack.c.bf16 %v1655_v60, %v1655_v60  ;;  %2468 = vmatprep.subr.bf16.mxu0 %v2837_v0 }
 0x4c3   :  { %2461 = vmatmul.mubr.msk.bf16.vlgmr.msra.gmra.mrb[60].mxu1 %vm1672_vm5, %v1663_v61 }
 0x4c4   :  { %2469 = vmatpush3.bf16.msra.mxu0 %v2579_v5 }
 0x4c5   :  { %2470 = vmatprep.subr.bf16.mxu0 %v2837_v0 }
 0x4c8   :  { %2471 = vmatpush3.bf16.msra.mxu0 %v2580_v6 }
 0x4c9   :  { %2472 = vmatprep.subr.bf16.mxu0 %v2837_v0 }
 0x4cc   :  { %2473 = vmatpush3.bf16.msra.mxu0 %v2581_v10 }
 0x4cd   :  { %2474 = vmatprep.subr.bf16.mxu0 %v2837_v0 }
 0x4d0   :  { %2475 = vmatpush3.bf16.msra.mxu0 %v2582_v7 }
 0x4d1   :  { %2476 = vmatprep.subr.bf16.mxu0 %v2837_v0 }
 0x4d4   :  { %2477 = vmatpush3.bf16.msra.mxu0 %v2583_v2 }
 0x4d5   :  { %2478 = vmatprep.subr.bf16.mxu0 %v2837_v0 }
 0x4d8   :  { %2479 = vmatpush3.bf16.msra.mxu0 %v2584_v18  ;;  %v2272_v18 = vld [vmem:[%s3569_s16] ss:$0 sm:$0xff] }
 0x55e   :  { %v1714_v17 = vpop.f32.mrb[20].mxu0 }
 0x55f   :  { %v2420_v19 = vpop.f32.mrb[21].mxu0  ;;  %v2042_v62 = vpack.c.bf16 %v1714_v17, %v1714_v17 }
 0x560   :  { %v1717_v63 = vpop.f32.mrb[22].mxu0 }
 0x561   :  { %v2421_v47 = vpop.f32.mrb[23].mxu0  ;;  %v2081_v24 = vunpack.c.l.b16 %v2042_v62 }
 0x566   :  { %v1760_v20 = vpop.f32.mrb[48].mxu1 }
 0x567   :  { %v2043_v41 = vpack.c.bf16 %v1760_v20, %v1760_v20  ;;  %v2426_v21 = vpop.f32.mrb[49].mxu1 }
 0x568   :  { %v1763_v4 = vpop.f32.mrb[50].mxu1 }
 0x569   :  { %v2082_v8 = vunpack.c.l.b16 %v2043_v41  ;;  %v2427_v22 = vpop.f32.mrb[51].mxu1 }
 0x56b   :  { %v2089_v15 = vrot.slane %v2082_v8, 7 }
 0x56d   :  { %v2091_v0 = vsel %vm2090_vm6, %v2089_v15, %v2081_v24 }
 0x56e   :  { %v1806_v52 = vpop.f32.mrb[24].mxu0 }
 0x56f   :  { %v2044_v25 = vpack.c.bf16 %v1806_v52, %v1806_v52  ;;  %v2432_v26 = vpop.f32.mrb[25].mxu0 }
 0x570   :  { %v1809_v27 = vpop.f32.mrb[26].mxu0 }
 0x571   :  { %v2083_v29 = vunpack.c.l.b16 %v2044_v25  ;;  %v2433_v1 = vpop.f32.mrb[27].mxu0 }
 0x573   :  { %v2092_v35 = vrot.slane %v2083_v29, 6 }
 0x575   :  { %v2094_v36 = vsel %vm2093_vm7, %v2092_v35, %v2091_v0 }
 0x576   :  { %v1852_v11 = vpop.f32.mrb[52].mxu1 }
 0x577   :  { %v2045_v38 = vpack.c.bf16 %v1852_v11, %v1852_v11  ;;  %v2438_v42 = vpop.f32.mrb[53].mxu1 }
 0x578   :  { %v1855_v43 = vpop.f32.mrb[54].mxu1 }
 0x579   :  { %v2084_v44 = vunpack.c.l.b16 %v2045_v38  ;;  %v2439_v16 = vpop.f32.mrb[55].mxu1 }
 0x57b   :  { %v2095_v37 = vrot.slane %v2084_v44, 5 }
 0x57d   :  { %v2097_v30 = vsel %vm2096_vm8, %v2095_v37, %v2094_v36 }
 0x57e   :  { %v1898_v13 = vpop.f32.mrb[28].mxu0 }
 0x57f   :  { %v2046_v45 = vpack.c.bf16 %v1898_v13, %v1898_v13  ;;  %v2444_v46 = vpop.f32.mrb[29].mxu0 }
 0x580   :  { %v1901_v31 = vpop.f32.mrb[30].mxu0 }
 0x581   :  { %v2085_v12 = vunpack.c.l.b16 %v2046_v45  ;;  %v2445_v48 = vpop.f32.mrb[31].mxu0 }
 0x583   :  { %v2098_v23 = vrot.slane %v2085_v12, 4 }
 0x585   :  { %v2100_v34 = vsel %vm2099_vm9, %v2098_v23, %v2097_v30 }
 0x586   :  { %v1944_v14 = vpop.f32.mrb[56].mxu1 }
 0x587   :  { %v2047_v32 = vpack.c.bf16 %v1944_v14, %v1944_v14  ;;  %v2450_v49 = vpop.f32.mrb[57].mxu1 }
 0x588   :  { %v1947_v50 = vpop.f32.mrb[58].mxu1 }
 0x589   :  { %v2086_v28 = vunpack.c.l.b16 %v2047_v32  ;;  %v2451_v51 = vpop.f32.mrb[59].mxu1 }
 0x58b   :  { %v2101_v53 = vrot.slane %v2086_v28, 3 }
 0x58d   :  { %v2103_v54 = vsel %vm2102_vm10, %v2101_v53, %v2100_v34 }
 0x58e   :  { %v1990_v40 = vpop.f32.mrb[32].mxu0 }
 0x58f   :  { %v2048_v55 = vpack.c.bf16 %v1990_v40, %v1990_v40  ;;  %v2456_v56 = vpop.f32.mrb[33].mxu0 }
 0x590   :  { %v1993_v57 = vpop.f32.mrb[34].mxu0 }
 0x591   :  { %v2087_v33 = vunpack.c.l.b16 %v2048_v55  ;;  %v2457_v9 = vpop.f32.mrb[35].mxu0 }
 0x593   :  { %v2104_v58 = vrot.slane %v2087_v33, 2 }
 0x595   :  { %v2106_v59 = vsel %vm2105_vm11, %v2104_v58, %v2103_v54 }
 0x596   :  { %v2036_v60 = vpop.f32.mrb[60].mxu1 }
 0x597   :  { %v2049_v61 = vpack.c.bf16 %v2036_v60, %v2036_v60  ;;  %v2462_v39 = vpop.f32.mrb[61].mxu1 }
 0x598   :  { %v2039_v3 = vpop.f32.mrb[62].mxu1 }
 0x599   :  { %v2088_v5 = vunpack.c.l.b16 %v2049_v61  ;;  %v2463_v6 = vpop.f32.mrb[63].mxu1 }
 0x59b   :  { %v2107_v10 = vrot.slane %v2088_v5, 1 }
 0x59d   :  { %v2109_v7 = vsel %vm2108_vm12, %v2107_v10, %v2106_v59 }
 0x59e   :  { %v2110_v2 = vpack.c.b16 %v2109_v7, %v2109_v7 }
 0x5a0   :  { %2481 = vmatmul.mubr.bf16.vlgmr.msra.gmra.mrb[36].mxu0 %v2110_v2 }
 0x673   :  { %v2194_v17 = vpop.f32.mrb[36].mxu0 }
 0x674   :  { %v2195_v19 = vadd.f32 %v2272_v18, %v2194_v17  ;;  %v2482_v63 = vpop.f32.mrb[37].mxu0 }
 0x675   :  { %v2197_v47 = vpop.f32.mrb[38].mxu0 }
 0x676   :  { %2200 = vst [vmem:[#allocation16] sm:$0xff] %v2195_v19  ;;  %v2483_v20 = vpop.f32.mrb[39].mxu0 }
 0x677   :  { %2804 = shalt.err (!%p2801_p12)
}
 0x678   :  { %s2805_s16 = scalar_lea.hbm %s3570_s17, 128 }
 0x679   :  { %p2806_p13 = scmp.ne.s32.totalorder %s3570_s17, %s2805_s16  ;;  %p2809_p0 = scmp.lt.u32.totalorder %s2805_s16, %s3570_s17 }
 0x67b   :  { %p2811_p1 = pnand %p2809_p0, %p2806_p13 }
 0x67d   :  { %2814 = shalt.err (!%p2811_p1)
}
 0x67e   :  { %2210 = dma.vmem_to_hbm [thread:$0]  %s2208_s28, 128, %s3570_s17, [#allocation4]  }
 0x67f   :  { %2825 = dma.done.wait [#allocation4], 128  }
 0x680   :  { %2826 = vsyncadd [#allocation4], 4294967168 }
 0x681   :  { %2214 = vsyncpa [#allocation3], 1 }
 0x682   :  { %2215 = vsyncpa [#allocation6], 1 }
 0x683   :  { %2216 = vsyncpa [#allocation9], 1 }
 0x684   :  { %2217 = vsyncpa [#allocation12], 1 }
 0x685   :  { %2218 = vsyncpa [#allocation15], 1 }
 0x686   :  { %2219 = vsyncpa [#allocation4], 1 }

</bundles_post_ra>
